<compile_context>
chip_gen: v5e
topology: v5e:2x2
jax: 0.10.0
libtpu: 0.0.40
codegen_flags: <defaults>
</compile_context>

<pallas_src>
import jax
import jax.numpy as jnp
from jax.experimental import pallas as pl
from jax.experimental.pallas import tpu as pltpu


def _layernorm(x, gamma, beta, eps=1e-5):
    # fp32 LayerNorm over the last dim (the LayerNorm subclass computes in f32).
    m = jnp.mean(x, axis=-1, keepdims=True)
    c = x - m
    var = jnp.mean(c * c, axis=-1, keepdims=True)
    return c * jax.lax.rsqrt(var + eps) * gamma + beta


def _block_kernel(x_ref,
                  wq_ref, bq_ref, wk_ref, bk_ref, wv_ref, bv_ref,
                  wo_ref, bo_ref,
                  ln1g_ref, ln1b_ref, ln2g_ref, ln2b_ref,
                  wfc_ref, bfc_ref, wproj_ref, bproj_ref,
                  o_ref,
                  ln1_scr, acc_scr):
    """grid = (batch, head). One step = one (batch, head) pair on an (S, D) slab."""
    h_idx = pl.program_id(1)

    # ---- init (first head of this batch element) ----
    @pl.when(h_idx == 0)
    def _init():
        x = x_ref[0].astype(jnp.float32)
        ln1_scr[...] = _layernorm(x, ln1g_ref[...], ln1b_ref[...])
        acc_scr[...] = jnp.zeros_like(acc_scr)

    # bf16 activations feed the MXU; accumulation stays f32.
    hb = ln1_scr[...].astype(jnp.bfloat16)                          # (S, D)

    # Per-head projections (1/sqrt(dh) is pre-folded into wq/bq on the host).
    q = jnp.dot(hb, wq_ref[0], preferred_element_type=jnp.float32) + bq_ref[0]
    k = jnp.dot(hb, wk_ref[0], preferred_element_type=jnp.float32) + bk_ref[0]
    v = jnp.dot(hb, wv_ref[0], preferred_element_type=jnp.float32) + bv_ref[0]

    s = jnp.dot(q.astype(jnp.bfloat16), k.T.astype(jnp.bfloat16),
                preferred_element_type=jnp.float32)                 # (S, S)
    # TODO(synk): attn_mask is None in this module instance; an additive mask
    #             would be added to `s` here.
    s = s - jnp.max(s, axis=-1, keepdims=True)
    p = jnp.exp(s)                                                  # unnormalized probs
    denom = jnp.sum(p, axis=-1, keepdims=True)                      # (S, 1)
    pv = jnp.dot(p.astype(jnp.bfloat16), v.astype(jnp.bfloat16),
                 preferred_element_type=jnp.float32)                # (S, dh)
    # Deferred softmax normalization: one EUP reciprocal + (S, dh) multiplies.
    attn_h = pv * pl.reciprocal(denom, approx=True)

    # concat(heads) @ Wo  ==  sum_h attn_h @ Wo_h  -> accumulate per head.
    acc_scr[...] += jnp.dot(attn_h.astype(jnp.bfloat16), wo_ref[0],
                            preferred_element_type=jnp.float32)     # (S, D)

    # ---- epilogue (last head): attention residual + MLP branch ----
    @pl.when(h_idx == pl.num_programs(1) - 1)
    def _finalize():
        x = x_ref[0].astype(jnp.float32)
        x1 = x + acc_scr[...] + bo_ref[...]
        h2 = _layernorm(x1, ln2g_ref[...], ln2b_ref[...])
        m = jnp.dot(h2.astype(jnp.bfloat16), wfc_ref[...],
                    preferred_element_type=jnp.float32) + bfc_ref[...]
        m = m * jax.nn.sigmoid(1.702 * m)                           # QuickGELU (f32)
        y = jnp.dot(m.astype(jnp.bfloat16), wproj_ref[...],
                    preferred_element_type=jnp.float32) + bproj_ref[...]
        o_ref[0] = (x1 + y).astype(o_ref.dtype)


def _vmem_limit_bytes(block_likes, extra_bytes):
    """Conservative scoped-VMEM request sized from the (padded) block footprint."""
    def padded_bytes(a):
        shp = list(a.shape)
        shp[-1] = -(-int(shp[-1]) // 128) * 128
        if len(shp) >= 2:
            shp[-2] = -(-int(shp[-2]) // 8) * 8
        n = 1
        for d in shp:
            n *= int(d)
        return n * jnp.dtype(a.dtype).itemsize
    total = sum(padded_bytes(a) for a in block_likes)
    est = 4 * total + extra_bytes + (4 << 20)   # <=2 pipeline buffers + temporaries headroom
    # 32 MiB = default scoped limit on all gens; 64 MiB = v7x physical VMEM per TC.
    return int(min(max(est, 32 << 20), 64 << 20))


def residual_attention_block_bsd(x_bsd, kp):
    """Batch-first entry point.  x_bsd: (B, S, D) float32; kp: prepared kernel params."""
    B, S, D = x_bsd.shape
    H = kp["wq_h"].shape[0]

    param_order = ("wq_h", "bq_h", "wk_h", "bk_h", "wv_h", "bv_h",
                   "wo_h", "bo", "ln1_g", "ln1_b", "ln2_g", "ln2_b",
                   "wfc_t", "bfc", "wproj_t", "bproj")
    head_params = {"wq_h", "bq_h", "wk_h", "bk_h", "wv_h", "bv_h", "wo_h"}

    scratch_bytes = 2 * 4 * S * (-(-D // 128) * 128)
    vmem_limit = _vmem_limit_bytes(
        [jax.ShapeDtypeStruct((1, S, D), x_bsd.dtype),       # x block
         jax.ShapeDtypeStruct((1, S, D), x_bsd.dtype)]       # out block
        + [kp[n] for n in param_order],                      # weight blocks (upper bound)
        scratch_bytes)

    def run(single_buffer_weights):
        use_buffered = single_buffer_weights and hasattr(pl, "Buffered")

        def const_spec(arr):
            shape = tuple(arr.shape)
            kwargs = {}
            if use_buffered:
                # Constant-index weight blocks: single-buffer to halve weight VMEM.
                kwargs["pipeline_mode"] = pl.Buffered(1)
            return pl.BlockSpec(shape, lambda b, h, _s=shape: (0,) * len(_s), **kwargs)

        def head_spec(arr):
            # (H, r, c) weight stack -> one head slice per inner grid step.
            return pl.BlockSpec((1,) + tuple(arr.shape[1:]), lambda b, h: (h, 0, 0))

        in_specs = [pl.BlockSpec((1, S, D), lambda b, h: (b, 0, 0))]   # x
        for name in param_order:
            in_specs.append(head_spec(kp[name]) if name in head_params
                            else const_spec(kp[name]))

        return pl.pallas_call(
            _block_kernel,
            grid=(B, H),
            in_specs=in_specs,
            out_specs=pl.BlockSpec((1, S, D), lambda b, h: (b, 0, 0)),
            out_shape=jax.ShapeDtypeStruct((B, S, D), x_bsd.dtype),
            scratch_shapes=[pltpu.VMEM((S, D), jnp.float32),   # LN1(x) cache
                            pltpu.VMEM((S, D), jnp.float32)],  # attention-branch accumulator
            compiler_params=pltpu.CompilerParams(
                dimension_semantics=("parallel", "arbitrary"),
                vmem_limit_bytes=vmem_limit),
        )(x_bsd, *[kp[n] for n in param_order])

    try:
        return run(single_buffer_weights=True)
    except Exception:
        # pipeline_mode=pl.Buffered(1) unsupported on this JAX build: default buffering.
        return run(single_buffer_weights=False)


def residual_attention_block_sbd(x_sbd, kp):
    """PyTorch nn.MultiheadAttention layout shim: (S, B, D) in/out.

    NOTE: production callers holding batch-first activations should call
    residual_attention_block_bsd directly to avoid these two HBM round trips.
    """
    x_bsd = jnp.transpose(x_sbd, (1, 0, 2))
    out = residual_attention_block_bsd(x_bsd, kp)
    return jnp.transpose(out, (1, 0, 2))


def prepare_kernel_params(p, n_head, compute_dtype=jnp.bfloat16):
    """Host-side one-time prep: split per head, fold 1/sqrt(dh) into Q, cast weights to bf16."""
    D = p["wo_t"].shape[0]
    dh = D // n_head
    scale = float(dh) ** -0.5

    wq_t = p["wqkv_t"][:, 0 * D:1 * D] * scale
    wk_t = p["wqkv_t"][:, 1 * D:2 * D]
    wv_t = p["wqkv_t"][:, 2 * D:3 * D]
    bq = p["bqkv"][:, 0 * D:1 * D] * scale
    bk = p["bqkv"][:, 1 * D:2 * D]
    bv = p["bqkv"][:, 2 * D:3 * D]

    def split_cols(w_t):   # (D, D) -> (H, D, dh): head h's output columns
        return jnp.transpose(w_t.reshape(D, n_head, dh), (1, 0, 2))

    def split_bias(b):     # (1, D) -> (H, 1, dh)
        return jnp.transpose(b.reshape(1, n_head, dh), (1, 0, 2))

    f32 = jnp.float32
    return {
        "wq_h": split_cols(wq_t).astype(compute_dtype),
        "bq_h": split_bias(bq).astype(f32),
        "wk_h": split_cols(wk_t).astype(compute_dtype),
        "bk_h": split_bias(bk).astype(f32),
        "wv_h": split_cols(wv_t).astype(compute_dtype),
        "bv_h": split_bias(bv).astype(f32),
        "wo_h": p["wo_t"].reshape(n_head, dh, D).astype(compute_dtype),
        "bo": p["bo"].astype(f32),
        "ln1_g": p["ln1_g"].astype(f32), "ln1_b": p["ln1_b"].astype(f32),
        "ln2_g": p["ln2_g"].astype(f32), "ln2_b": p["ln2_b"].astype(f32),
        "wfc_t": p["wfc_t"].astype(compute_dtype),
        "bfc": p["bfc"].astype(f32),
        "wproj_t": p["wproj_t"].astype(compute_dtype),
        "bproj": p["bproj"].astype(f32),
    }


def _reference(x_sbd, params, n_head):
    """Pure-JAX f32 reference mirroring PyTorch nn.MultiheadAttention + MLP."""
    S, B, D = x_sbd.shape
    dh = D // n_head
    x = jnp.transpose(x_sbd, (1, 0, 2))                    # (B, S, D)

    def ln(v, g, b):
        m = jnp.mean(v, -1, keepdims=True)
        var = jnp.mean((v - m) ** 2, -1, keepdims=True)
        return (v - m) / jnp.sqrt(var + 1e-5) * g + b

    h = ln(x, params["ln1_g"], params["ln1_b"])
    qkv = h @ params["wqkv_t"] + params["bqkv"]
    q, k, v = jnp.split(qkv, 3, axis=-1)
    q = q.reshape(B, S, n_head, dh).transpose(0, 2, 1, 3) * (dh ** -0.5)
    k = k.reshape(B, S, n_head, dh).transpose(0, 2, 1, 3)
    v = v.reshape(B, S, n_head, dh).transpose(0, 2, 1, 3)
    s = jnp.einsum("bhqd,bhkd->bhqk", q, k)
    p = jax.nn.softmax(s, axis=-1)
    o = jnp.einsum("bhqk,bhkd->bhqd", p, v).transpose(0, 2, 1, 3).reshape(B, S, D)
    o = o @ params["wo_t"] + params["bo"]
    x1 = x + o
    h2 = ln(x1, params["ln2_g"], params["ln2_b"])
    m = h2 @ params["wfc_t"] + params["bfc"]
    m = m * jax.nn.sigmoid(1.702 * m)
    m = m @ params["wproj_t"] + params["bproj"]
    return jnp.transpose(x1 + m, (1, 0, 2))


def _init_params(key, d_model):
    ks = jax.random.split(key, 8)
    std = 0.02
    D = d_model
    return {
        "ln1_g": jnp.ones((1, D), jnp.float32),
        "ln1_b": jnp.zeros((1, D), jnp.float32),
        # weights stored as W^T (in_features, out_features)
        "wqkv_t": (std * jax.random.normal(ks[0], (D, 3 * D))).astype(jnp.float32),
        "bqkv": (std * jax.random.normal(ks[1], (1, 3 * D))).astype(jnp.float32),
        "wo_t": (std * jax.random.normal(ks[2], (D, D))).astype(jnp.float32),
        "bo": (std * jax.random.normal(ks[3], (1, D))).astype(jnp.float32),
        "ln2_g": jnp.ones((1, D), jnp.float32),
        "ln2_b": jnp.zeros((1, D), jnp.float32),
        "wfc_t": (std * jax.random.normal(ks[4], (D, 4 * D))).astype(jnp.float32),
        "bfc": (std * jax.random.normal(ks[5], (1, 4 * D))).astype(jnp.float32),
        "wproj_t": (std * jax.random.normal(ks[6], (4 * D, D))).astype(jnp.float32),
        "bproj": (std * jax.random.normal(ks[7], (1, D))).astype(jnp.float32),
    }


if __name__ == "__main__":
    S, B, D, H = 8, 2, 32, 4      # seq=8, batch=2, d_model=32, n_head=4
    key = jax.random.PRNGKey(0)
    kx, kparam = jax.random.split(key)
    x = jax.random.normal(kx, (S, B, D), dtype=jnp.float32)   # PyTorch (S, B, D) layout
    params = _init_params(kparam, D)
    kernel_params = prepare_kernel_params(params, H)

    out = jax.block_until_ready(residual_attention_block_sbd(x, kernel_params))

    ref = _reference(x, params, H)
    assert out.shape == (S, B, D)
    # bf16 matmul operands + approx reciprocal vs an f32 reference -> loose tolerance.
    assert jnp.allclose(out, ref, atol=2e-2, rtol=2e-2), "mismatch vs reference"
    print("KERNEL_OK")
</pallas_src>

<mosaic_0001>
module attributes {stable_mosaic.version = 11 : i64} {
  func.func @_block_kernel(%arg0: i32, %arg1: i32, %arg2: memref<1x8x32xf32, #tpu.memory_space<vmem>>, %arg3: memref<1x32x8xbf16, #tpu.memory_space<vmem>>, %arg4: memref<1x1x8xf32, #tpu.memory_space<vmem>>, %arg5: memref<1x32x8xbf16, #tpu.memory_space<vmem>>, %arg6: memref<1x1x8xf32, #tpu.memory_space<vmem>>, %arg7: memref<1x32x8xbf16, #tpu.memory_space<vmem>>, %arg8: memref<1x1x8xf32, #tpu.memory_space<vmem>>, %arg9: memref<1x8x32xbf16, #tpu.memory_space<vmem>>, %arg10: memref<1x32xf32, #tpu.memory_space<vmem>>, %arg11: memref<1x32xf32, #tpu.memory_space<vmem>>, %arg12: memref<1x32xf32, #tpu.memory_space<vmem>>, %arg13: memref<1x32xf32, #tpu.memory_space<vmem>>, %arg14: memref<1x32xf32, #tpu.memory_space<vmem>>, %arg15: memref<32x128xbf16, #tpu.memory_space<vmem>>, %arg16: memref<1x128xf32, #tpu.memory_space<vmem>>, %arg17: memref<128x32xbf16, #tpu.memory_space<vmem>>, %arg18: memref<1x32xf32, #tpu.memory_space<vmem>>, %arg19: memref<1x8x32xf32, #tpu.memory_space<vmem>>, %arg20: memref<8x32xf32, #tpu.memory_space<vmem>>, %arg21: memref<8x32xf32, #tpu.memory_space<vmem>>) attributes {dimension_semantics = [#tpu.dimension_semantics<parallel>, #tpu.dimension_semantics<arbitrary>], iteration_bounds = array<i64: 2, 4>, scalar_prefetch = 0 : i64, scratch_operands = 2 : i64, tpu.core_type = #tpu.core_type<tc>, window_params = [{transform_indices = @transform_0, window_bounds = array<i64: 1, 8, 32>}, {transform_indices = @transform_1, window_bounds = array<i64: 1, 32, 8>}, {transform_indices = @transform_2, window_bounds = array<i64: 1, 1, 8>}, {transform_indices = @transform_3, window_bounds = array<i64: 1, 32, 8>}, {transform_indices = @transform_4, window_bounds = array<i64: 1, 1, 8>}, {transform_indices = @transform_5, window_bounds = array<i64: 1, 32, 8>}, {transform_indices = @transform_6, window_bounds = array<i64: 1, 1, 8>}, {transform_indices = @transform_7, window_bounds = array<i64: 1, 8, 32>}, {pipeline_mode = #tpu.pipeline_mode<synchronous>, transform_indices = @transform_8, window_bounds = array<i64: 1, 32>}, {pipeline_mode = #tpu.pipeline_mode<synchronous>, transform_indices = @transform_9, window_bounds = array<i64: 1, 32>}, {pipeline_mode = #tpu.pipeline_mode<synchronous>, transform_indices = @transform_10, window_bounds = array<i64: 1, 32>}, {pipeline_mode = #tpu.pipeline_mode<synchronous>, transform_indices = @transform_11, window_bounds = array<i64: 1, 32>}, {pipeline_mode = #tpu.pipeline_mode<synchronous>, transform_indices = @transform_12, window_bounds = array<i64: 1, 32>}, {pipeline_mode = #tpu.pipeline_mode<synchronous>, transform_indices = @transform_13, window_bounds = array<i64: 32, 128>}, {pipeline_mode = #tpu.pipeline_mode<synchronous>, transform_indices = @transform_14, window_bounds = array<i64: 1, 128>}, {pipeline_mode = #tpu.pipeline_mode<synchronous>, transform_indices = @transform_15, window_bounds = array<i64: 128, 32>}, {pipeline_mode = #tpu.pipeline_mode<synchronous>, transform_indices = @transform_16, window_bounds = array<i64: 1, 32>}, {transform_indices = @transform_17, window_bounds = array<i64: 1, 8, 32>}]} {
    %c0_i32 = arith.constant 0 : i32
    %0 = arith.cmpi eq, %arg1, %c0_i32 : i32
    %1 = arith.extui %0 : i1 to i32
    %c0_i32_0 = arith.constant 0 : i32
    %2 = arith.cmpi ne, %1, %c0_i32_0 : i32
    scf.if %2 {
      %c0_35 = arith.constant 0 : index
      %c0_36 = arith.constant 0 : index
      %c0_37 = arith.constant 0 : index
      %53 = vector.load %arg2[%c0_35, %c0_36, %c0_37] : memref<1x8x32xf32, #tpu.memory_space<vmem>>, vector<1x8x32xf32>
      %54 = vector.shape_cast %53 : vector<1x8x32xf32> to vector<8x32xf32>
      %c0_38 = arith.constant 0 : index
      %c0_39 = arith.constant 0 : index
      %55 = vector.load %arg11[%c0_38, %c0_39] : memref<1x32xf32, #tpu.memory_space<vmem>>, vector<1x32xf32>
      %c0_40 = arith.constant 0 : index
      %c0_41 = arith.constant 0 : index
      %56 = vector.load %arg12[%c0_40, %c0_41] : memref<1x32xf32, #tpu.memory_space<vmem>>, vector<1x32xf32>
      %cst_42 = arith.constant dense<0.000000e+00> : vector<8xf32>
      %57 = vector.multi_reduction <add>, %54, %cst_42 [1] : vector<8x32xf32> to vector<8xf32>
      %58 = vector.shape_cast %57 : vector<8xf32> to vector<8x1xf32>
      %cst_43 = arith.constant 3.200000e+01 : f32
      %59 = vector.broadcast %cst_43 : f32 to vector<8x1xf32>
      %60 = arith.divf %58, %59 : vector<8x1xf32>
      %61 = vector.broadcast %60 : vector<8x1xf32> to vector<8x32xf32>
      %62 = arith.subf %54, %61 : vector<8x32xf32>
      %63 = arith.mulf %62, %62 : vector<8x32xf32>
      %cst_44 = arith.constant dense<0.000000e+00> : vector<8xf32>
      %64 = vector.multi_reduction <add>, %63, %cst_44 [1] : vector<8x32xf32> to vector<8xf32>
      %65 = vector.shape_cast %64 : vector<8xf32> to vector<8x1xf32>
      %cst_45 = arith.constant 3.200000e+01 : f32
      %66 = vector.broadcast %cst_45 : f32 to vector<8x1xf32>
      %67 = arith.divf %65, %66 : vector<8x1xf32>
      %cst_46 = arith.constant 9.99999974E-6 : f32
      %68 = vector.broadcast %cst_46 : f32 to vector<8x1xf32>
      %69 = arith.addf %67, %68 : vector<8x1xf32>
      %70 = math.rsqrt %69 : vector<8x1xf32>
      %71 = vector.broadcast %70 : vector<8x1xf32> to vector<8x32xf32>
      %72 = arith.mulf %62, %71 : vector<8x32xf32>
      %73 = vector.broadcast %55 : vector<1x32xf32> to vector<8x32xf32>
      %74 = arith.mulf %72, %73 : vector<8x32xf32>
      %75 = vector.broadcast %56 : vector<1x32xf32> to vector<8x32xf32>
      %76 = arith.addf %74, %75 : vector<8x32xf32>
      %c0_47 = arith.constant 0 : index
      %c0_48 = arith.constant 0 : index
      %77 = vector.load %arg20[%c0_47, %c0_48] : memref<8x32xf32, #tpu.memory_space<vmem>>, vector<8x32xf32>
      tpu.vector_store %arg20[%c0_47, %c0_48], %76 {strides = array<i32>} : memref<8x32xf32, #tpu.memory_space<vmem>>, vector<8x32xf32>,
      %cst_49 = arith.constant 0.000000e+00 : f32
      %78 = vector.broadcast %cst_49 : f32 to vector<8x32xf32>
      %c0_50 = arith.constant 0 : index
      %c0_51 = arith.constant 0 : index
      %79 = vector.load %arg21[%c0_50, %c0_51] : memref<8x32xf32, #tpu.memory_space<vmem>>, vector<8x32xf32>
      tpu.vector_store %arg21[%c0_50, %c0_51], %78 {strides = array<i32>} : memref<8x32xf32, #tpu.memory_space<vmem>>, vector<8x32xf32>,
    } else {
    }
    %c0 = arith.constant 0 : index
    %c0_1 = arith.constant 0 : index
    %3 = vector.load %arg20[%c0, %c0_1] : memref<8x32xf32, #tpu.memory_space<vmem>>, vector<8x32xf32>
    %4 = arith.truncf %3 : vector<8x32xf32> to vector<8x32xbf16>
    %c0_2 = arith.constant 0 : index
    %c0_3 = arith.constant 0 : index
    %c0_4 = arith.constant 0 : index
    %5 = vector.load %arg3[%c0_2, %c0_3, %c0_4] : memref<1x32x8xbf16, #tpu.memory_space<vmem>>, vector<1x32x8xbf16>
    %6 = vector.shape_cast %5 : vector<1x32x8xbf16> to vector<32x8xbf16>
    %cst = arith.constant dense<0.000000e+00> : vector<8x8xf32>
    %7 = tpu.matmul %4, %6, %cst {dimension_numbers = #tpu.dot_dimension_numbers<[1], [0], [0], [1], [0, 0, 1, 1], [], []>} : vector<8x32xbf16>, vector<32x8xbf16>, vector<8x8xf32> -> vector<8x8xf32>
    %c0_5 = arith.constant 0 : index
    %c0_6 = arith.constant 0 : index
    %c0_7 = arith.constant 0 : index
    %8 = vector.load %arg4[%c0_5, %c0_6, %c0_7] : memref<1x1x8xf32, #tpu.memory_space<vmem>>, vector<1x1x8xf32>
    %9 = vector.shape_cast %8 : vector<1x1x8xf32> to vector<1x8xf32>
    %10 = vector.broadcast %9 : vector<1x8xf32> to vector<8x8xf32>
    %11 = arith.addf %7, %10 : vector<8x8xf32>
    %c0_8 = arith.constant 0 : index
    %c0_9 = arith.constant 0 : index
    %c0_10 = arith.constant 0 : index
    %12 = vector.load %arg5[%c0_8, %c0_9, %c0_10] : memref<1x32x8xbf16, #tpu.memory_space<vmem>>, vector<1x32x8xbf16>
    %13 = vector.shape_cast %12 : vector<1x32x8xbf16> to vector<32x8xbf16>
    %cst_11 = arith.constant dense<0.000000e+00> : vector<8x8xf32>
    %14 = tpu.matmul %4, %13, %cst_11 {dimension_numbers = #tpu.dot_dimension_numbers<[1], [0], [0], [1], [0, 0, 1, 1], [], []>} : vector<8x32xbf16>, vector<32x8xbf16>, vector<8x8xf32> -> vector<8x8xf32>
    %c0_12 = arith.constant 0 : index
    %c0_13 = arith.constant 0 : index
    %c0_14 = arith.constant 0 : index
    %15 = vector.load %arg6[%c0_12, %c0_13, %c0_14] : memref<1x1x8xf32, #tpu.memory_space<vmem>>, vector<1x1x8xf32>
    %16 = vector.shape_cast %15 : vector<1x1x8xf32> to vector<1x8xf32>
    %17 = vector.broadcast %16 : vector<1x8xf32> to vector<8x8xf32>
    %18 = arith.addf %14, %17 : vector<8x8xf32>
    %c0_15 = arith.constant 0 : index
    %c0_16 = arith.constant 0 : index
    %c0_17 = arith.constant 0 : index
    %19 = vector.load %arg7[%c0_15, %c0_16, %c0_17] : memref<1x32x8xbf16, #tpu.memory_space<vmem>>, vector<1x32x8xbf16>
    %20 = vector.shape_cast %19 : vector<1x32x8xbf16> to vector<32x8xbf16>
    %cst_18 = arith.constant dense<0.000000e+00> : vector<8x8xf32>
    %21 = tpu.matmul %4, %20, %cst_18 {dimension_numbers = #tpu.dot_dimension_numbers<[1], [0], [0], [1], [0, 0, 1, 1], [], []>} : vector<8x32xbf16>, vector<32x8xbf16>, vector<8x8xf32> -> vector<8x8xf32>
    %c0_19 = arith.constant 0 : index
    %c0_20 = arith.constant 0 : index
    %c0_21 = arith.constant 0 : index
    %22 = vector.load %arg8[%c0_19, %c0_20, %c0_21] : memref<1x1x8xf32, #tpu.memory_space<vmem>>, vector<1x1x8xf32>
    %23 = vector.shape_cast %22 : vector<1x1x8xf32> to vector<1x8xf32>
    %24 = vector.broadcast %23 : vector<1x8xf32> to vector<8x8xf32>
    %25 = arith.addf %21, %24 : vector<8x8xf32>
    %26 = arith.truncf %11 : vector<8x8xf32> to vector<8x8xbf16>
    %27 = tpu.transpose %18, [1, 0] : vector<8x8xf32> -> vector<8x8xf32>
    %28 = arith.truncf %27 : vector<8x8xf32> to vector<8x8xbf16>
    %cst_22 = arith.constant dense<0.000000e+00> : vector<8x8xf32>
    %29 = tpu.matmul %26, %28, %cst_22 {dimension_numbers = #tpu.dot_dimension_numbers<[1], [0], [0], [1], [0, 0, 1, 1], [], []>} : vector<8x8xbf16>, vector<8x8xbf16>, vector<8x8xf32> -> vector<8x8xf32>
    %cst_23 = arith.constant dense<0xFF800000> : vector<8xf32>
    %30 = vector.multi_reduction <maximumf>, %29, %cst_23 [1] : vector<8x8xf32> to vector<8xf32>
    %31 = vector.shape_cast %30 : vector<8xf32> to vector<8x1xf32>
    %32 = vector.broadcast %31 : vector<8x1xf32> to vector<8x8xf32>
    %33 = arith.subf %29, %32 : vector<8x8xf32>
    %34 = math.exp %33 : vector<8x8xf32>
    %cst_24 = arith.constant dense<0.000000e+00> : vector<8xf32>
    %35 = vector.multi_reduction <add>, %34, %cst_24 [1] : vector<8x8xf32> to vector<8xf32>
    %36 = vector.shape_cast %35 : vector<8xf32> to vector<8x1xf32>
    %37 = arith.truncf %34 : vector<8x8xf32> to vector<8x8xbf16>
    %38 = arith.truncf %25 : vector<8x8xf32> to vector<8x8xbf16>
    %cst_25 = arith.constant dense<0.000000e+00> : vector<8x8xf32>
    %39 = tpu.matmul %37, %38, %cst_25 {dimension_numbers = #tpu.dot_dimension_numbers<[1], [0], [0], [1], [0, 0, 1, 1], [], []>} : vector<8x8xbf16>, vector<8x8xbf16>, vector<8x8xf32> -> vector<8x8xf32>
    %40 = tpu.reciprocal %36 {approx = true} : vector<8x1xf32> -> vector<8x1xf32>
    %41 = vector.broadcast %40 : vector<8x1xf32> to vector<8x8xf32>
    %42 = arith.mulf %39, %41 : vector<8x8xf32>
    %c0_26 = arith.constant 0 : index
    %c0_27 = arith.constant 0 : index
    %43 = vector.load %arg21[%c0_26, %c0_27] : memref<8x32xf32, #tpu.memory_space<vmem>>, vector<8x32xf32>
    %44 = arith.truncf %42 : vector<8x8xf32> to vector<8x8xbf16>
    %c0_28 = arith.constant 0 : index
    %c0_29 = arith.constant 0 : index
    %c0_30 = arith.constant 0 : index
    %45 = vector.load %arg9[%c0_28, %c0_29, %c0_30] : memref<1x8x32xbf16, #tpu.memory_space<vmem>>, vector<1x8x32xbf16>
    %46 = vector.shape_cast %45 : vector<1x8x32xbf16> to vector<8x32xbf16>
    %cst_31 = arith.constant dense<0.000000e+00> : vector<8x32xf32>
    %47 = tpu.matmul %44, %46, %cst_31 {dimension_numbers = #tpu.dot_dimension_numbers<[1], [0], [0], [1], [0, 0, 1, 1], [], []>} : vector<8x8xbf16>, vector<8x32xbf16>, vector<8x32xf32> -> vector<8x32xf32>
    %48 = arith.addf %43, %47 : vector<8x32xf32>
    %c0_32 = arith.constant 0 : index
    %c0_33 = arith.constant 0 : index
    %49 = vector.load %arg21[%c0_32, %c0_33] : memref<8x32xf32, #tpu.memory_space<vmem>>, vector<8x32xf32>
    tpu.vector_store %arg21[%c0_32, %c0_33], %48 {strides = array<i32>} : memref<8x32xf32, #tpu.memory_space<vmem>>, vector<8x32xf32>,
    %c3_i32 = arith.constant 3 : i32
    %50 = arith.cmpi eq, %arg1, %c3_i32 : i32
    %51 = arith.extui %50 : i1 to i32
    %c0_i32_34 = arith.constant 0 : i32
    %52 = arith.cmpi ne, %51, %c0_i32_34 : i32
    scf.if %52 {
      %c0_35 = arith.constant 0 : index
      %c0_36 = arith.constant 0 : index
      %c0_37 = arith.constant 0 : index
      %53 = vector.load %arg2[%c0_35, %c0_36, %c0_37] : memref<1x8x32xf32, #tpu.memory_space<vmem>>, vector<1x8x32xf32>
      %54 = vector.shape_cast %53 : vector<1x8x32xf32> to vector<8x32xf32>
      %c0_38 = arith.constant 0 : index
      %c0_39 = arith.constant 0 : index
      %55 = vector.load %arg21[%c0_38, %c0_39] : memref<8x32xf32, #tpu.memory_space<vmem>>, vector<8x32xf32>
      %56 = arith.addf %54, %55 : vector<8x32xf32>
      %c0_40 = arith.constant 0 : index
      %c0_41 = arith.constant 0 : index
      %57 = vector.load %arg10[%c0_40, %c0_41] : memref<1x32xf32, #tpu.memory_space<vmem>>, vector<1x32xf32>
      %58 = vector.broadcast %57 : vector<1x32xf32> to vector<8x32xf32>
      %59 = arith.addf %56, %58 : vector<8x32xf32>
      %c0_42 = arith.constant 0 : index
      %c0_43 = arith.constant 0 : index
      %60 = vector.load %arg13[%c0_42, %c0_43] : memref<1x32xf32, #tpu.memory_space<vmem>>, vector<1x32xf32>
      %c0_44 = arith.constant 0 : index
      %c0_45 = arith.constant 0 : index
      %61 = vector.load %arg14[%c0_44, %c0_45] : memref<1x32xf32, #tpu.memory_space<vmem>>, vector<1x32xf32>
      %cst_46 = arith.constant dense<0.000000e+00> : vector<8xf32>
      %62 = vector.multi_reduction <add>, %59, %cst_46 [1] : vector<8x32xf32> to vector<8xf32>
      %63 = vector.shape_cast %62 : vector<8xf32> to vector<8x1xf32>
      %cst_47 = arith.constant 3.200000e+01 : f32
      %64 = vector.broadcast %cst_47 : f32 to vector<8x1xf32>
      %65 = arith.divf %63, %64 : vector<8x1xf32>
      %66 = vector.broadcast %65 : vector<8x1xf32> to vector<8x32xf32>
      %67 = arith.subf %59, %66 : vector<8x32xf32>
      %68 = arith.mulf %67, %67 : vector<8x32xf32>
      %cst_48 = arith.constant dense<0.000000e+00> : vector<8xf32>
      %69 = vector.multi_reduction <add>, %68, %cst_48 [1] : vector<8x32xf32> to vector<8xf32>
      %70 = vector.shape_cast %69 : vector<8xf32> to vector<8x1xf32>
      %cst_49 = arith.constant 3.200000e+01 : f32
      %71 = vector.broadcast %cst_49 : f32 to vector<8x1xf32>
      %72 = arith.divf %70, %71 : vector<8x1xf32>
      %cst_50 = arith.constant 9.99999974E-6 : f32
      %73 = vector.broadcast %cst_50 : f32 to vector<8x1xf32>
      %74 = arith.addf %72, %73 : vector<8x1xf32>
      %75 = math.rsqrt %74 : vector<8x1xf32>
      %76 = vector.broadcast %75 : vector<8x1xf32> to vector<8x32xf32>
      %77 = arith.mulf %67, %76 : vector<8x32xf32>
      %78 = vector.broadcast %60 : vector<1x32xf32> to vector<8x32xf32>
      %79 = arith.mulf %77, %78 : vector<8x32xf32>
      %80 = vector.broadcast %61 : vector<1x32xf32> to vector<8x32xf32>
      %81 = arith.addf %79, %80 : vector<8x32xf32>
      %82 = arith.truncf %81 : vector<8x32xf32> to vector<8x32xbf16>
      %c0_51 = arith.constant 0 : index
      %c0_52 = arith.constant 0 : index
      %83 = vector.load %arg15[%c0_51, %c0_52] : memref<32x128xbf16, #tpu.memory_space<vmem>>, vector<32x128xbf16>
      %cst_53 = arith.constant dense<0.000000e+00> : vector<8x128xf32>
      %84 = tpu.matmul %82, %83, %cst_53 {dimension_numbers = #tpu.dot_dimension_numbers<[1], [0], [0], [1], [0, 0, 1, 1], [], []>} : vector<8x32xbf16>, vector<32x128xbf16>, vector<8x128xf32> -> vector<8x128xf32>
      %c0_54 = arith.constant 0 : index
      %c0_55 = arith.constant 0 : index
      %85 = vector.load %arg16[%c0_54, %c0_55] : memref<1x128xf32, #tpu.memory_space<vmem>>, vector<1x128xf32>
      %86 = vector.broadcast %85 : vector<1x128xf32> to vector<8x128xf32>
      %87 = arith.addf %84, %86 : vector<8x128xf32>
      %cst_56 = arith.constant 1.702000e+00 : f32
      %88 = vector.broadcast %cst_56 : f32 to vector<8x128xf32>
      %89 = arith.mulf %88, %87 : vector<8x128xf32>
      %90 = arith.negf %89 : vector<8x128xf32>
      %91 = math.exp %90 : vector<8x128xf32>
      %cst_57 = arith.constant 1.000000e+00 : f32
      %92 = vector.broadcast %cst_57 : f32 to vector<8x128xf32>
      %93 = arith.addf %92, %91 : vector<8x128xf32>
      %94 = arith.divf %92, %93 : vector<8x128xf32>
      %95 = arith.mulf %87, %94 : vector<8x128xf32>
      %96 = arith.truncf %95 : vector<8x128xf32> to vector<8x128xbf16>
      %c0_58 = arith.constant 0 : index
      %c0_59 = arith.constant 0 : index
      %97 = vector.load %arg17[%c0_58, %c0_59] : memref<128x32xbf16, #tpu.memory_space<vmem>>, vector<128x32xbf16>
      %cst_60 = arith.constant dense<0.000000e+00> : vector<8x32xf32>
      %98 = tpu.matmul %96, %97, %cst_60 {dimension_numbers = #tpu.dot_dimension_numbers<[1], [0], [0], [1], [0, 0, 1, 1], [], []>} : vector<8x128xbf16>, vector<128x32xbf16>, vector<8x32xf32> -> vector<8x32xf32>
      %c0_61 = arith.constant 0 : index
      %c0_62 = arith.constant 0 : index
      %99 = vector.load %arg18[%c0_61, %c0_62] : memref<1x32xf32, #tpu.memory_space<vmem>>, vector<1x32xf32>
      %100 = vector.broadcast %99 : vector<1x32xf32> to vector<8x32xf32>
      %101 = arith.addf %98, %100 : vector<8x32xf32>
      %102 = arith.addf %59, %101 : vector<8x32xf32>
      %c0_63 = arith.constant 0 : index
      %c0_64 = arith.constant 0 : index
      %c0_65 = arith.constant 0 : index
      %103 = vector.load %arg19[%c0_63, %c0_64, %c0_65] : memref<1x8x32xf32, #tpu.memory_space<vmem>>, vector<1x8x32xf32>
      %104 = vector.shape_cast %103 : vector<1x8x32xf32> to vector<8x32xf32>
      %105 = vector.shape_cast %102 : vector<8x32xf32> to vector<1x8x32xf32>
      tpu.vector_store %arg19[%c0_63, %c0_64, %c0_65], %105 {strides = array<i32>} : memref<1x8x32xf32, #tpu.memory_space<vmem>>, vector<1x8x32xf32>,
    } else {
    }
    return
  }
  func.func @transform_0(%arg0: i32, %arg1: i32) -> (i32, i32, i32) {
    %c0_i32 = arith.constant 0 : i32
    %c0_i32_0 = arith.constant 0 : i32
    %c0_i32_1 = arith.constant 0 : i32
    return %arg0, %c0_i32, %c0_i32_0 : i32, i32, i32
  }
  func.func @transform_1(%arg0: i32, %arg1: i32) -> (i32, i32, i32) {
    %c0_i32 = arith.constant 0 : i32
    %c0_i32_0 = arith.constant 0 : i32
    %c0_i32_1 = arith.constant 0 : i32
    return %arg1, %c0_i32, %c0_i32_0 : i32, i32, i32
  }
  func.func @transform_2(%arg0: i32, %arg1: i32) -> (i32, i32, i32) {
    %c0_i32 = arith.constant 0 : i32
    %c0_i32_0 = arith.constant 0 : i32
    %c0_i32_1 = arith.constant 0 : i32
    return %arg1, %c0_i32, %c0_i32_0 : i32, i32, i32
  }
  func.func @transform_3(%arg0: i32, %arg1: i32) -> (i32, i32, i32) {
    %c0_i32 = arith.constant 0 : i32
    %c0_i32_0 = arith.constant 0 : i32
    %c0_i32_1 = arith.constant 0 : i32
    return %arg1, %c0_i32, %c0_i32_0 : i32, i32, i32
  }
  func.func @transform_4(%arg0: i32, %arg1: i32) -> (i32, i32, i32) {
    %c0_i32 = arith.constant 0 : i32
    %c0_i32_0 = arith.constant 0 : i32
    %c0_i32_1 = arith.constant 0 : i32
    return %arg1, %c0_i32, %c0_i32_0 : i32, i32, i32
  }
  func.func @transform_5(%arg0: i32, %arg1: i32) -> (i32, i32, i32) {
    %c0_i32 = arith.constant 0 : i32
    %c0_i32_0 = arith.constant 0 : i32
    %c0_i32_1 = arith.constant 0 : i32
    return %arg1, %c0_i32, %c0_i32_0 : i32, i32, i32
  }
  func.func @transform_6(%arg0: i32, %arg1: i32) -> (i32, i32, i32) {
    %c0_i32 = arith.constant 0 : i32
    %c0_i32_0 = arith.constant 0 : i32
    %c0_i32_1 = arith.constant 0 : i32
    return %arg1, %c0_i32, %c0_i32_0 : i32, i32, i32
  }
  func.func @transform_7(%arg0: i32, %arg1: i32) -> (i32, i32, i32) {
    %c0_i32 = arith.constant 0 : i32
    %c0_i32_0 = arith.constant 0 : i32
    %c0_i32_1 = arith.constant 0 : i32
    return %arg1, %c0_i32, %c0_i32_0 : i32, i32, i32
  }
  func.func @transform_8(%arg0: i32, %arg1: i32) -> (i32, i32) {
    %c0_i32 = arith.constant 0 : i32
    %c0_i32_0 = arith.constant 0 : i32
    %c0_i32_1 = arith.constant 0 : i32
    return %c0_i32, %c0_i32_0 : i32, i32
  }
  func.func @transform_9(%arg0: i32, %arg1: i32) -> (i32, i32) {
    %c0_i32 = arith.constant 0 : i32
    %c0_i32_0 = arith.constant 0 : i32
    %c0_i32_1 = arith.constant 0 : i32
    return %c0_i32, %c0_i32_0 : i32, i32
  }
  func.func @transform_10(%arg0: i32, %arg1: i32) -> (i32, i32) {
    %c0_i32 = arith.constant 0 : i32
    %c0_i32_0 = arith.constant 0 : i32
    %c0_i32_1 = arith.constant 0 : i32
    return %c0_i32, %c0_i32_0 : i32, i32
  }
  func.func @transform_11(%arg0: i32, %arg1: i32) -> (i32, i32) {
    %c0_i32 = arith.constant 0 : i32
    %c0_i32_0 = arith.constant 0 : i32
    %c0_i32_1 = arith.constant 0 : i32
    return %c0_i32, %c0_i32_0 : i32, i32
  }
  func.func @transform_12(%arg0: i32, %arg1: i32) -> (i32, i32) {
    %c0_i32 = arith.constant 0 : i32
    %c0_i32_0 = arith.constant 0 : i32
    %c0_i32_1 = arith.constant 0 : i32
    return %c0_i32, %c0_i32_0 : i32, i32
  }
  func.func @transform_13(%arg0: i32, %arg1: i32) -> (i32, i32) {
    %c0_i32 = arith.constant 0 : i32
    %c0_i32_0 = arith.constant 0 : i32
    %c0_i32_1 = arith.constant 0 : i32
    return %c0_i32, %c0_i32_0 : i32, i32
  }
  func.func @transform_14(%arg0: i32, %arg1: i32) -> (i32, i32) {
    %c0_i32 = arith.constant 0 : i32
    %c0_i32_0 = arith.constant 0 : i32
    %c0_i32_1 = arith.constant 0 : i32
    return %c0_i32, %c0_i32_0 : i32, i32
  }
  func.func @transform_15(%arg0: i32, %arg1: i32) -> (i32, i32) {
    %c0_i32 = arith.constant 0 : i32
    %c0_i32_0 = arith.constant 0 : i32
    %c0_i32_1 = arith.constant 0 : i32
    return %c0_i32, %c0_i32_0 : i32, i32
  }
  func.func @transform_16(%arg0: i32, %arg1: i32) -> (i32, i32) {
    %c0_i32 = arith.constant 0 : i32
    %c0_i32_0 = arith.constant 0 : i32
    %c0_i32_1 = arith.constant 0 : i32
    return %c0_i32, %c0_i32_0 : i32, i32
  }
  func.func @transform_17(%arg0: i32, %arg1: i32) -> (i32, i32, i32) {
    %c0_i32 = arith.constant 0 : i32
    %c0_i32_0 = arith.constant 0 : i32
    %c0_i32_1 = arith.constant 0 : i32
    return %arg0, %c0_i32, %c0_i32_0 : i32, i32, i32
  }
}

module attributes {stable_mosaic.version = 11 : i64} {
  func.func @_block_kernel(%arg0: i32, %arg1: i32, %arg2: memref<1x8x32xf32, #tpu.memory_space<vmem>>, %arg3: memref<1x32x8xbf16, #tpu.memory_space<vmem>>, %arg4: memref<1x1x8xf32, #tpu.memory_space<vmem>>, %arg5: memref<1x32x8xbf16, #tpu.memory_space<vmem>>, %arg6: memref<1x1x8xf32, #tpu.memory_space<vmem>>, %arg7: memref<1x32x8xbf16, #tpu.memory_space<vmem>>, %arg8: memref<1x1x8xf32, #tpu.memory_space<vmem>>, %arg9: memref<1x8x32xbf16, #tpu.memory_space<vmem>>, %arg10: memref<1x32xf32, #tpu.memory_space<vmem>>, %arg11: memref<1x32xf32, #tpu.memory_space<vmem>>, %arg12: memref<1x32xf32, #tpu.memory_space<vmem>>, %arg13: memref<1x32xf32, #tpu.memory_space<vmem>>, %arg14: memref<1x32xf32, #tpu.memory_space<vmem>>, %arg15: memref<32x128xbf16, #tpu.memory_space<vmem>>, %arg16: memref<1x128xf32, #tpu.memory_space<vmem>>, %arg17: memref<128x32xbf16, #tpu.memory_space<vmem>>, %arg18: memref<1x32xf32, #tpu.memory_space<vmem>>, %arg19: memref<1x8x32xf32, #tpu.memory_space<vmem>>, %arg20: memref<8x32xf32, #tpu.memory_space<vmem>>, %arg21: memref<8x32xf32, #tpu.memory_space<vmem>>) attributes {dimension_semantics = [#tpu.dimension_semantics<parallel>, #tpu.dimension_semantics<arbitrary>], iteration_bounds = array<i64: 2, 4>, scalar_prefetch = 0 : i64, scratch_operands = 2 : i64, tpu.core_type = #tpu.core_type<tc>, window_params = [{transform_indices = @transform_0, window_bounds = array<i64: 1, 8, 32>}, {transform_indices = @transform_1, window_bounds = array<i64: 1, 32, 8>}, {transform_indices = @transform_2, window_bounds = array<i64: 1, 1, 8>}, {transform_indices = @transform_3, window_bounds = array<i64: 1, 32, 8>}, {transform_indices = @transform_4, window_bounds = array<i64: 1, 1, 8>}, {transform_indices = @transform_5, window_bounds = array<i64: 1, 32, 8>}, {transform_indices = @transform_6, window_bounds = array<i64: 1, 1, 8>}, {transform_indices = @transform_7, window_bounds = array<i64: 1, 8, 32>}, {pipeline_mode = #tpu.pipeline_mode<synchronous>, transform_indices = @transform_8, window_bounds = array<i64: 1, 32>}, {pipeline_mode = #tpu.pipeline_mode<synchronous>, transform_indices = @transform_9, window_bounds = array<i64: 1, 32>}, {pipeline_mode = #tpu.pipeline_mode<synchronous>, transform_indices = @transform_10, window_bounds = array<i64: 1, 32>}, {pipeline_mode = #tpu.pipeline_mode<synchronous>, transform_indices = @transform_11, window_bounds = array<i64: 1, 32>}, {pipeline_mode = #tpu.pipeline_mode<synchronous>, transform_indices = @transform_12, window_bounds = array<i64: 1, 32>}, {pipeline_mode = #tpu.pipeline_mode<synchronous>, transform_indices = @transform_13, window_bounds = array<i64: 32, 128>}, {pipeline_mode = #tpu.pipeline_mode<synchronous>, transform_indices = @transform_14, window_bounds = array<i64: 1, 128>}, {pipeline_mode = #tpu.pipeline_mode<synchronous>, transform_indices = @transform_15, window_bounds = array<i64: 128, 32>}, {pipeline_mode = #tpu.pipeline_mode<synchronous>, transform_indices = @transform_16, window_bounds = array<i64: 1, 32>}, {transform_indices = @transform_17, window_bounds = array<i64: 1, 8, 32>}]} {
    %c0_i32 = arith.constant 0 : i32
    %0 = arith.cmpi eq, %arg1, %c0_i32 : i32
    %1 = arith.extui %0 : i1 to i32
    %c0_i32_0 = arith.constant 0 : i32
    %2 = arith.cmpi ne, %1, %c0_i32_0 : i32
    scf.if %2 {
      %c0_35 = arith.constant 0 : index
      %c0_36 = arith.constant 0 : index
      %c0_37 = arith.constant 0 : index
      %53 = vector.load %arg2[%c0_35, %c0_36, %c0_37] : memref<1x8x32xf32, #tpu.memory_space<vmem>>, vector<1x8x32xf32>
      %54 = vector.shape_cast %53 : vector<1x8x32xf32> to vector<8x32xf32>
      %c0_38 = arith.constant 0 : index
      %c0_39 = arith.constant 0 : index
      %55 = vector.load %arg11[%c0_38, %c0_39] : memref<1x32xf32, #tpu.memory_space<vmem>>, vector<1x32xf32>
      %c0_40 = arith.constant 0 : index
      %c0_41 = arith.constant 0 : index
      %56 = vector.load %arg12[%c0_40, %c0_41] : memref<1x32xf32, #tpu.memory_space<vmem>>, vector<1x32xf32>
      %cst_42 = arith.constant dense<0.000000e+00> : vector<8xf32>
      %57 = vector.multi_reduction <add>, %54, %cst_42 [1] : vector<8x32xf32> to vector<8xf32>
      %58 = vector.shape_cast %57 : vector<8xf32> to vector<8x1xf32>
      %cst_43 = arith.constant 3.200000e+01 : f32
      %59 = vector.broadcast %cst_43 : f32 to vector<8x1xf32>
      %60 = arith.divf %58, %59 : vector<8x1xf32>
      %61 = vector.broadcast %60 : vector<8x1xf32> to vector<8x32xf32>
      %62 = arith.subf %54, %61 : vector<8x32xf32>
      %63 = arith.mulf %62, %62 : vector<8x32xf32>
      %cst_44 = arith.constant dense<0.000000e+00> : vector<8xf32>
      %64 = vector.multi_reduction <add>, %63, %cst_44 [1] : vector<8x32xf32> to vector<8xf32>
      %65 = vector.shape_cast %64 : vector<8xf32> to vector<8x1xf32>
      %cst_45 = arith.constant 3.200000e+01 : f32
      %66 = vector.broadcast %cst_45 : f32 to vector<8x1xf32>
      %67 = arith.divf %65, %66 : vector<8x1xf32>
      %cst_46 = arith.constant 9.99999974E-6 : f32
      %68 = vector.broadcast %cst_46 : f32 to vector<8x1xf32>
      %69 = arith.addf %67, %68 : vector<8x1xf32>
      %70 = math.rsqrt %69 : vector<8x1xf32>
      %71 = vector.broadcast %70 : vector<8x1xf32> to vector<8x32xf32>
      %72 = arith.mulf %62, %71 : vector<8x32xf32>
      %73 = vector.broadcast %55 : vector<1x32xf32> to vector<8x32xf32>
      %74 = arith.mulf %72, %73 : vector<8x32xf32>
      %75 = vector.broadcast %56 : vector<1x32xf32> to vector<8x32xf32>
      %76 = arith.addf %74, %75 : vector<8x32xf32>
      %c0_47 = arith.constant 0 : index
      %c0_48 = arith.constant 0 : index
      %77 = vector.load %arg20[%c0_47, %c0_48] : memref<8x32xf32, #tpu.memory_space<vmem>>, vector<8x32xf32>
      tpu.vector_store %arg20[%c0_47, %c0_48], %76 {strides = array<i32>} : memref<8x32xf32, #tpu.memory_space<vmem>>, vector<8x32xf32>,
      %cst_49 = arith.constant 0.000000e+00 : f32
      %78 = vector.broadcast %cst_49 : f32 to vector<8x32xf32>
      %c0_50 = arith.constant 0 : index
      %c0_51 = arith.constant 0 : index
      %79 = vector.load %arg21[%c0_50, %c0_51] : memref<8x32xf32, #tpu.memory_space<vmem>>, vector<8x32xf32>
      tpu.vector_store %arg21[%c0_50, %c0_51], %78 {strides = array<i32>} : memref<8x32xf32, #tpu.memory_space<vmem>>, vector<8x32xf32>,
    } else {
    }
    %c0 = arith.constant 0 : index
    %c0_1 = arith.constant 0 : index
    %3 = vector.load %arg20[%c0, %c0_1] : memref<8x32xf32, #tpu.memory_space<vmem>>, vector<8x32xf32>
    %4 = arith.truncf %3 : vector<8x32xf32> to vector<8x32xbf16>
    %c0_2 = arith.constant 0 : index
    %c0_3 = arith.constant 0 : index
    %c0_4 = arith.constant 0 : index
    %5 = vector.load %arg3[%c0_2, %c0_3, %c0_4] : memref<1x32x8xbf16, #tpu.memory_space<vmem>>, vector<1x32x8xbf16>
    %6 = vector.shape_cast %5 : vector<1x32x8xbf16> to vector<32x8xbf16>
    %cst = arith.constant dense<0.000000e+00> : vector<8x8xf32>
    %7 = tpu.matmul %4, %6, %cst {dimension_numbers = #tpu.dot_dimension_numbers<[1], [0], [0], [1], [0, 0, 1, 1], [], []>} : vector<8x32xbf16>, vector<32x8xbf16>, vector<8x8xf32> -> vector<8x8xf32>
    %c0_5 = arith.constant 0 : index
    %c0_6 = arith.constant 0 : index
    %c0_7 = arith.constant 0 : index
    %8 = vector.load %arg4[%c0_5, %c0_6, %c0_7] : memref<1x1x8xf32, #tpu.memory_space<vmem>>, vector<1x1x8xf32>
    %9 = vector.shape_cast %8 : vector<1x1x8xf32> to vector<1x8xf32>
    %10 = vector.broadcast %9 : vector<1x8xf32> to vector<8x8xf32>
    %11 = arith.addf %7, %10 : vector<8x8xf32>
    %c0_8 = arith.constant 0 : index
    %c0_9 = arith.constant 0 : index
    %c0_10 = arith.constant 0 : index
    %12 = vector.load %arg5[%c0_8, %c0_9, %c0_10] : memref<1x32x8xbf16, #tpu.memory_space<vmem>>, vector<1x32x8xbf16>
    %13 = vector.shape_cast %12 : vector<1x32x8xbf16> to vector<32x8xbf16>
    %cst_11 = arith.constant dense<0.000000e+00> : vector<8x8xf32>
    %14 = tpu.matmul %4, %13, %cst_11 {dimension_numbers = #tpu.dot_dimension_numbers<[1], [0], [0], [1], [0, 0, 1, 1], [], []>} : vector<8x32xbf16>, vector<32x8xbf16>, vector<8x8xf32> -> vector<8x8xf32>
    %c0_12 = arith.constant 0 : index
    %c0_13 = arith.constant 0 : index
    %c0_14 = arith.constant 0 : index
    %15 = vector.load %arg6[%c0_12, %c0_13, %c0_14] : memref<1x1x8xf32, #tpu.memory_space<vmem>>, vector<1x1x8xf32>
    %16 = vector.shape_cast %15 : vector<1x1x8xf32> to vector<1x8xf32>
    %17 = vector.broadcast %16 : vector<1x8xf32> to vector<8x8xf32>
    %18 = arith.addf %14, %17 : vector<8x8xf32>
    %c0_15 = arith.constant 0 : index
    %c0_16 = arith.constant 0 : index
    %c0_17 = arith.constant 0 : index
    %19 = vector.load %arg7[%c0_15, %c0_16, %c0_17] : memref<1x32x8xbf16, #tpu.memory_space<vmem>>, vector<1x32x8xbf16>
    %20 = vector.shape_cast %19 : vector<1x32x8xbf16> to vector<32x8xbf16>
    %cst_18 = arith.constant dense<0.000000e+00> : vector<8x8xf32>
    %21 = tpu.matmul %4, %20, %cst_18 {dimension_numbers = #tpu.dot_dimension_numbers<[1], [0], [0], [1], [0, 0, 1, 1], [], []>} : vector<8x32xbf16>, vector<32x8xbf16>, vector<8x8xf32> -> vector<8x8xf32>
    %c0_19 = arith.constant 0 : index
    %c0_20 = arith.constant 0 : index
    %c0_21 = arith.constant 0 : index
    %22 = vector.load %arg8[%c0_19, %c0_20, %c0_21] : memref<1x1x8xf32, #tpu.memory_space<vmem>>, vector<1x1x8xf32>
    %23 = vector.shape_cast %22 : vector<1x1x8xf32> to vector<1x8xf32>
    %24 = vector.broadcast %23 : vector<1x8xf32> to vector<8x8xf32>
    %25 = arith.addf %21, %24 : vector<8x8xf32>
    %26 = arith.truncf %11 : vector<8x8xf32> to vector<8x8xbf16>
    %27 = tpu.transpose %18, [1, 0] : vector<8x8xf32> -> vector<8x8xf32>
    %28 = arith.truncf %27 : vector<8x8xf32> to vector<8x8xbf16>
    %cst_22 = arith.constant dense<0.000000e+00> : vector<8x8xf32>
    %29 = tpu.matmul %26, %28, %cst_22 {dimension_numbers = #tpu.dot_dimension_numbers<[1], [0], [0], [1], [0, 0, 1, 1], [], []>} : vector<8x8xbf16>, vector<8x8xbf16>, vector<8x8xf32> -> vector<8x8xf32>
    %cst_23 = arith.constant dense<0xFF800000> : vector<8xf32>
    %30 = vector.multi_reduction <maximumf>, %29, %cst_23 [1] : vector<8x8xf32> to vector<8xf32>
    %31 = vector.shape_cast %30 : vector<8xf32> to vector<8x1xf32>
    %32 = vector.broadcast %31 : vector<8x1xf32> to vector<8x8xf32>
    %33 = arith.subf %29, %32 : vector<8x8xf32>
    %34 = math.exp %33 : vector<8x8xf32>
    %cst_24 = arith.constant dense<0.000000e+00> : vector<8xf32>
    %35 = vector.multi_reduction <add>, %34, %cst_24 [1] : vector<8x8xf32> to vector<8xf32>
    %36 = vector.shape_cast %35 : vector<8xf32> to vector<8x1xf32>
    %37 = arith.truncf %34 : vector<8x8xf32> to vector<8x8xbf16>
    %38 = arith.truncf %25 : vector<8x8xf32> to vector<8x8xbf16>
    %cst_25 = arith.constant dense<0.000000e+00> : vector<8x8xf32>
    %39 = tpu.matmul %37, %38, %cst_25 {dimension_numbers = #tpu.dot_dimension_numbers<[1], [0], [0], [1], [0, 0, 1, 1], [], []>} : vector<8x8xbf16>, vector<8x8xbf16>, vector<8x8xf32> -> vector<8x8xf32>
    %40 = tpu.reciprocal %36 {approx = true} : vector<8x1xf32> -> vector<8x1xf32>
    %41 = vector.broadcast %40 : vector<8x1xf32> to vector<8x8xf32>
    %42 = arith.mulf %39, %41 : vector<8x8xf32>
    %c0_26 = arith.constant 0 : index
    %c0_27 = arith.constant 0 : index
    %43 = vector.load %arg21[%c0_26, %c0_27] : memref<8x32xf32, #tpu.memory_space<vmem>>, vector<8x32xf32>
    %44 = arith.truncf %42 : vector<8x8xf32> to vector<8x8xbf16>
    %c0_28 = arith.constant 0 : index
    %c0_29 = arith.constant 0 : index
    %c0_30 = arith.constant 0 : index
    %45 = vector.load %arg9[%c0_28, %c0_29, %c0_30] : memref<1x8x32xbf16, #tpu.memory_space<vmem>>, vector<1x8x32xbf16>
    %46 = vector.shape_cast %45 : vector<1x8x32xbf16> to vector<8x32xbf16>
    %cst_31 = arith.constant dense<0.000000e+00> : vector<8x32xf32>
    %47 = tpu.matmul %44, %46, %cst_31 {dimension_numbers = #tpu.dot_dimension_numbers<[1], [0], [0], [1], [0, 0, 1, 1], [], []>} : vector<8x8xbf16>, vector<8x32xbf16>, vector<8x32xf32> -> vector<8x32xf32>
    %48 = arith.addf %43, %47 : vector<8x32xf32>
    %c0_32 = arith.constant 0 : index
    %c0_33 = arith.constant 0 : index
    %49 = vector.load %arg21[%c0_32, %c0_33] : memref<8x32xf32, #tpu.memory_space<vmem>>, vector<8x32xf32>
    tpu.vector_store %arg21[%c0_32, %c0_33], %48 {strides = array<i32>} : memref<8x32xf32, #tpu.memory_space<vmem>>, vector<8x32xf32>,
    %c3_i32 = arith.constant 3 : i32
    %50 = arith.cmpi eq, %arg1, %c3_i32 : i32
    %51 = arith.extui %50 : i1 to i32
    %c0_i32_34 = arith.constant 0 : i32
    %52 = arith.cmpi ne, %51, %c0_i32_34 : i32
    scf.if %52 {
      %c0_35 = arith.constant 0 : index
      %c0_36 = arith.constant 0 : index
      %c0_37 = arith.constant 0 : index
      %53 = vector.load %arg2[%c0_35, %c0_36, %c0_37] : memref<1x8x32xf32, #tpu.memory_space<vmem>>, vector<1x8x32xf32>
      %54 = vector.shape_cast %53 : vector<1x8x32xf32> to vector<8x32xf32>
      %c0_38 = arith.constant 0 : index
      %c0_39 = arith.constant 0 : index
      %55 = vector.load %arg21[%c0_38, %c0_39] : memref<8x32xf32, #tpu.memory_space<vmem>>, vector<8x32xf32>
      %56 = arith.addf %54, %55 : vector<8x32xf32>
      %c0_40 = arith.constant 0 : index
      %c0_41 = arith.constant 0 : index
      %57 = vector.load %arg10[%c0_40, %c0_41] : memref<1x32xf32, #tpu.memory_space<vmem>>, vector<1x32xf32>
      %58 = vector.broadcast %57 : vector<1x32xf32> to vector<8x32xf32>
      %59 = arith.addf %56, %58 : vector<8x32xf32>
      %c0_42 = arith.constant 0 : index
      %c0_43 = arith.constant 0 : index
      %60 = vector.load %arg13[%c0_42, %c0_43] : memref<1x32xf32, #tpu.memory_space<vmem>>, vector<1x32xf32>
      %c0_44 = arith.constant 0 : index
      %c0_45 = arith.constant 0 : index
      %61 = vector.load %arg14[%c0_44, %c0_45] : memref<1x32xf32, #tpu.memory_space<vmem>>, vector<1x32xf32>
      %cst_46 = arith.constant dense<0.000000e+00> : vector<8xf32>
      %62 = vector.multi_reduction <add>, %59, %cst_46 [1] : vector<8x32xf32> to vector<8xf32>
      %63 = vector.shape_cast %62 : vector<8xf32> to vector<8x1xf32>
      %cst_47 = arith.constant 3.200000e+01 : f32
      %64 = vector.broadcast %cst_47 : f32 to vector<8x1xf32>
      %65 = arith.divf %63, %64 : vector<8x1xf32>
      %66 = vector.broadcast %65 : vector<8x1xf32> to vector<8x32xf32>
      %67 = arith.subf %59, %66 : vector<8x32xf32>
      %68 = arith.mulf %67, %67 : vector<8x32xf32>
      %cst_48 = arith.constant dense<0.000000e+00> : vector<8xf32>
      %69 = vector.multi_reduction <add>, %68, %cst_48 [1] : vector<8x32xf32> to vector<8xf32>
      %70 = vector.shape_cast %69 : vector<8xf32> to vector<8x1xf32>
      %cst_49 = arith.constant 3.200000e+01 : f32
      %71 = vector.broadcast %cst_49 : f32 to vector<8x1xf32>
      %72 = arith.divf %70, %71 : vector<8x1xf32>
      %cst_50 = arith.constant 9.99999974E-6 : f32
      %73 = vector.broadcast %cst_50 : f32 to vector<8x1xf32>
      %74 = arith.addf %72, %73 : vector<8x1xf32>
      %75 = math.rsqrt %74 : vector<8x1xf32>
      %76 = vector.broadcast %75 : vector<8x1xf32> to vector<8x32xf32>
      %77 = arith.mulf %67, %76 : vector<8x32xf32>
      %78 = vector.broadcast %60 : vector<1x32xf32> to vector<8x32xf32>
      %79 = arith.mulf %77, %78 : vector<8x32xf32>
      %80 = vector.broadcast %61 : vector<1x32xf32> to vector<8x32xf32>
      %81 = arith.addf %79, %80 : vector<8x32xf32>
      %82 = arith.truncf %81 : vector<8x32xf32> to vector<8x32xbf16>
      %c0_51 = arith.constant 0 : index
      %c0_52 = arith.constant 0 : index
      %83 = vector.load %arg15[%c0_51, %c0_52] : memref<32x128xbf16, #tpu.memory_space<vmem>>, vector<32x128xbf16>
      %cst_53 = arith.constant dense<0.000000e+00> : vector<8x128xf32>
      %84 = tpu.matmul %82, %83, %cst_53 {dimension_numbers = #tpu.dot_dimension_numbers<[1], [0], [0], [1], [0, 0, 1, 1], [], []>} : vector<8x32xbf16>, vector<32x128xbf16>, vector<8x128xf32> -> vector<8x128xf32>
      %c0_54 = arith.constant 0 : index
      %c0_55 = arith.constant 0 : index
      %85 = vector.load %arg16[%c0_54, %c0_55] : memref<1x128xf32, #tpu.memory_space<vmem>>, vector<1x128xf32>
      %86 = vector.broadcast %85 : vector<1x128xf32> to vector<8x128xf32>
      %87 = arith.addf %84, %86 : vector<8x128xf32>
      %cst_56 = arith.constant 1.702000e+00 : f32
      %88 = vector.broadcast %cst_56 : f32 to vector<8x128xf32>
      %89 = arith.mulf %88, %87 : vector<8x128xf32>
      %90 = arith.negf %89 : vector<8x128xf32>
      %91 = math.exp %90 : vector<8x128xf32>
      %cst_57 = arith.constant 1.000000e+00 : f32
      %92 = vector.broadcast %cst_57 : f32 to vector<8x128xf32>
      %93 = arith.addf %92, %91 : vector<8x128xf32>
      %94 = arith.divf %92, %93 : vector<8x128xf32>
      %95 = arith.mulf %87, %94 : vector<8x128xf32>
      %96 = arith.truncf %95 : vector<8x128xf32> to vector<8x128xbf16>
      %c0_58 = arith.constant 0 : index
      %c0_59 = arith.constant 0 : index
      %97 = vector.load %arg17[%c0_58, %c0_59] : memref<128x32xbf16, #tpu.memory_space<vmem>>, vector<128x32xbf16>
      %cst_60 = arith.constant dense<0.000000e+00> : vector<8x32xf32>
      %98 = tpu.matmul %96, %97, %cst_60 {dimension_numbers = #tpu.dot_dimension_numbers<[1], [0], [0], [1], [0, 0, 1, 1], [], []>} : vector<8x128xbf16>, vector<128x32xbf16>, vector<8x32xf32> -> vector<8x32xf32>
      %c0_61 = arith.constant 0 : index
      %c0_62 = arith.constant 0 : index
      %99 = vector.load %arg18[%c0_61, %c0_62] : memref<1x32xf32, #tpu.memory_space<vmem>>, vector<1x32xf32>
      %100 = vector.broadcast %99 : vector<1x32xf32> to vector<8x32xf32>
      %101 = arith.addf %98, %100 : vector<8x32xf32>
      %102 = arith.addf %59, %101 : vector<8x32xf32>
      %c0_63 = arith.constant 0 : index
      %c0_64 = arith.constant 0 : index
      %c0_65 = arith.constant 0 : index
      %103 = vector.load %arg19[%c0_63, %c0_64, %c0_65] : memref<1x8x32xf32, #tpu.memory_space<vmem>>, vector<1x8x32xf32>
      %104 = vector.shape_cast %103 : vector<1x8x32xf32> to vector<8x32xf32>
      %105 = vector.shape_cast %102 : vector<8x32xf32> to vector<1x8x32xf32>
      tpu.vector_store %arg19[%c0_63, %c0_64, %c0_65], %105 {strides = array<i32>} : memref<1x8x32xf32, #tpu.memory_space<vmem>>, vector<1x8x32xf32>,
    } else {
    }
    return
  }
  func.func @transform_0(%arg0: i32, %arg1: i32) -> (i32, i32, i32) {
    %c0_i32 = arith.constant 0 : i32
    %c0_i32_0 = arith.constant 0 : i32
    %c0_i32_1 = arith.constant 0 : i32
    return %arg0, %c0_i32, %c0_i32_0 : i32, i32, i32
  }
  func.func @transform_1(%arg0: i32, %arg1: i32) -> (i32, i32, i32) {
    %c0_i32 = arith.constant 0 : i32
    %c0_i32_0 = arith.constant 0 : i32
    %c0_i32_1 = arith.constant 0 : i32
    return %arg1, %c0_i32, %c0_i32_0 : i32, i32, i32
  }
  func.func @transform_2(%arg0: i32, %arg1: i32) -> (i32, i32, i32) {
    %c0_i32 = arith.constant 0 : i32
    %c0_i32_0 = arith.constant 0 : i32
    %c0_i32_1 = arith.constant 0 : i32
    return %arg1, %c0_i32, %c0_i32_0 : i32, i32, i32
  }
  func.func @transform_3(%arg0: i32, %arg1: i32) -> (i32, i32, i32) {
    %c0_i32 = arith.constant 0 : i32
    %c0_i32_0 = arith.constant 0 : i32
    %c0_i32_1 = arith.constant 0 : i32
    return %arg1, %c0_i32, %c0_i32_0 : i32, i32, i32
  }
  func.func @transform_4(%arg0: i32, %arg1: i32) -> (i32, i32, i32) {
    %c0_i32 = arith.constant 0 : i32
    %c0_i32_0 = arith.constant 0 : i32
    %c0_i32_1 = arith.constant 0 : i32
    return %arg1, %c0_i32, %c0_i32_0 : i32, i32, i32
  }
  func.func @transform_5(%arg0: i32, %arg1: i32) -> (i32, i32, i32) {
    %c0_i32 = arith.constant 0 : i32
    %c0_i32_0 = arith.constant 0 : i32
    %c0_i32_1 = arith.constant 0 : i32
    return %arg1, %c0_i32, %c0_i32_0 : i32, i32, i32
  }
  func.func @transform_6(%arg0: i32, %arg1: i32) -> (i32, i32, i32) {
    %c0_i32 = arith.constant 0 : i32
    %c0_i32_0 = arith.constant 0 : i32
    %c0_i32_1 = arith.constant 0 : i32
    return %arg1, %c0_i32, %c0_i32_0 : i32, i32, i32
  }
  func.func @transform_7(%arg0: i32, %arg1: i32) -> (i32, i32, i32) {
    %c0_i32 = arith.constant 0 : i32
    %c0_i32_0 = arith.constant 0 : i32
    %c0_i32_1 = arith.constant 0 : i32
    return %arg1, %c0_i32, %c0_i32_0 : i32, i32, i32
  }
  func.func @transform_8(%arg0: i32, %arg1: i32) -> (i32, i32) {
    %c0_i32 = arith.constant 0 : i32
    %c0_i32_0 = arith.constant 0 : i32
    %c0_i32_1 = arith.constant 0 : i32
    return %c0_i32, %c0_i32_0 : i32, i32
  }
  func.func @transform_9(%arg0: i32, %arg1: i32) -> (i32, i32) {
    %c0_i32 = arith.constant 0 : i32
    %c0_i32_0 = arith.constant 0 : i32
    %c0_i32_1 = arith.constant 0 : i32
    return %c0_i32, %c0_i32_0 : i32, i32
  }
  func.func @transform_10(%arg0: i32, %arg1: i32) -> (i32, i32) {
    %c0_i32 = arith.constant 0 : i32
    %c0_i32_0 = arith.constant 0 : i32
    %c0_i32_1 = arith.constant 0 : i32
    return %c0_i32, %c0_i32_0 : i32, i32
  }
  func.func @transform_11(%arg0: i32, %arg1: i32) -> (i32, i32) {
    %c0_i32 = arith.constant 0 : i32
    %c0_i32_0 = arith.constant 0 : i32
    %c0_i32_1 = arith.constant 0 : i32
    return %c0_i32, %c0_i32_0 : i32, i32
  }
  func.func @transform_12(%arg0: i32, %arg1: i32) -> (i32, i32) {
    %c0_i32 = arith.constant 0 : i32
    %c0_i32_0 = arith.constant 0 : i32
    %c0_i32_1 = arith.constant 0 : i32
    return %c0_i32, %c0_i32_0 : i32, i32
  }
  func.func @transform_13(%arg0: i32, %arg1: i32) -> (i32, i32) {
    %c0_i32 = arith.constant 0 : i32
    %c0_i32_0 = arith.constant 0 : i32
    %c0_i32_1 = arith.constant 0 : i32
    return %c0_i32, %c0_i32_0 : i32, i32
  }
  func.func @transform_14(%arg0: i32, %arg1: i32) -> (i32, i32) {
    %c0_i32 = arith.constant 0 : i32
    %c0_i32_0 = arith.constant 0 : i32
    %c0_i32_1 = arith.constant 0 : i32
    return %c0_i32, %c0_i32_0 : i32, i32
  }
  func.func @transform_15(%arg0: i32, %arg1: i32) -> (i32, i32) {
    %c0_i32 = arith.constant 0 : i32
    %c0_i32_0 = arith.constant 0 : i32
    %c0_i32_1 = arith.constant 0 : i32
    return %c0_i32, %c0_i32_0 : i32, i32
  }
  func.func @transform_16(%arg0: i32, %arg1: i32) -> (i32, i32) {
    %c0_i32 = arith.constant 0 : i32
    %c0_i32_0 = arith.constant 0 : i32
    %c0_i32_1 = arith.constant 0 : i32
    return %c0_i32, %c0_i32_0 : i32, i32
  }
  func.func @transform_17(%arg0: i32, %arg1: i32) -> (i32, i32, i32) {
    %c0_i32 = arith.constant 0 : i32
    %c0_i32_0 = arith.constant 0 : i32
    %c0_i32_1 = arith.constant 0 : i32
    return %arg0, %c0_i32, %c0_i32_0 : i32, i32, i32
  }
}

</mosaic_0001>

<bundles_post_ra>
// kernel: tpu_custom_call.1
= control target key start
LH: loop header
LB: loop body
LE: loop exit
PB: predicated region body
PF: predicated region fallthrough
CT: control target
= control target key end

     0   :  { %s1964_s0 = inlined_call_operand.vmem [shape: f32[2,8,32], index: 0, kind: input, shape index: {}]   ;;  %s1965_s1 = inlined_call_operand.vmem [shape: bf16[4,32,8], index: 1, kind: input, shape index: {}]   ;;  %s1966_s2 = inlined_call_operand.vmem [shape: f32[4,1,8], index: 2, kind: input, shape index: {}]   ;;  %s1967_s3 = inlined_call_operand.vmem [shape: bf16[4,32,8], index: 3, kind: input, shape index: {}]   ;;  %s1968_s4 = inlined_call_operand.vmem [shape: f32[4,1,8], index: 4, kind: input, shape index: {}]   ;;  %s1969_s5 = inlined_call_operand.vmem [shape: bf16[4,32,8], index: 5, kind: input, shape index: {}]   ;;  %s1970_s6 = inlined_call_operand.vmem [shape: f32[4,1,8], index: 6, kind: input, shape index: {}]   ;;  %s1971_s7 = inlined_call_operand.vmem [shape: bf16[4,8,32], index: 7, kind: input, shape index: {}]   ;;  %s1972_s8 = inlined_call_operand.vmem [shape: f32[1,32], index: 8, kind: input, shape index: {}]   ;;  %s1973_s9 = inlined_call_operand.vmem [shape: f32[1,32], index: 9, kind: input, shape index: {}]   ;;  %s1974_s10 = inlined_call_operand.vmem [shape: f32[1,32], index: 10, kind: input, shape index: {}]   ;;  %s1975_s11 = inlined_call_operand.vmem [shape: f32[1,32], index: 11, kind: input, shape index: {}]   ;;  %s1976_s12 = inlined_call_operand.vmem [shape: f32[1,32], index: 12, kind: input, shape index: {}]   ;;  %s1977_s13 = inlined_call_operand.vmem [shape: bf16[32,128], index: 13, kind: input, shape index: {}]   ;;  %s1978_s14 = inlined_call_operand.vmem [shape: f32[1,128], index: 14, kind: input, shape index: {}]   ;;  %s1979_s15 = inlined_call_operand.vmem [shape: bf16[128,32], index: 15, kind: input, shape index: {}]   ;;  %s1980_s16 = inlined_call_operand.vmem [shape: f32[1,32], index: 16, kind: input, shape index: {}]   ;;  %s1981_s17 = inlined_call_operand.hbm [shape: f32[2,8,32], index: 17, kind: output, shape index: {}]  }
   0x1   :  { %1997 = sst [smem:[#allocation19_spill]] %s1964_s0 }
   0x2   :  { %1998 = sst [smem:[#allocation20_spill]] %s1965_s1 }
   0x3   :  { %1999 = sst [smem:[#allocation21_spill]] %s1975_s11 }
   0x4   :  { %2000 = sst [smem:[#allocation22_spill]] %s1976_s12 }
   0x5   :  { %2001 = sst [smem:[#allocation23_spill]] %s1978_s14 }
   0x6   :  { %2002 = sst [smem:[#allocation24_spill]] %s1979_s15 }
   0x7   :  { %2003 = sst [smem:[#allocation25_spill]] %s1980_s16 }
   0x8   :  { %2004 = sst [smem:[#allocation26_spill]] %s1981_s17 }
   0x9   :  { %22 = vsyncpa [#allocation5], 0 }
   0xa   :  { %24 = vsyncpa [#allocation5 + $0x1], 0  ;;  %s1694_s24 = smov 0   ;;  %s1696_s25 = smov 0  }
   0xb   :  { %s1698_s26 = smov 0   ;;  %s1700_s27 = smov 0  }
   0xc   :  { %s1702_s28 = smov 0   ;;  %s1704_s29 = smov 0  }
   0xd   :  { %s1706_s0 = smov 0   ;;  %s1708_s30 = smov 0  }
   0xe LB: > { %2005 = sst [smem:[#allocation7_spill]] %s1571_s24  ;;  %s1293_s18 = sadd.s32 4294967295, %s1599_s30   ;;  %s1599_s30 = sphi %s1708_s30, %s30_s30   ;;  %s1595_s0 = sphi %s1706_s0, %s2041_s0   ;;  %s1591_s29 = sphi %s1704_s29, %s2040_s29   ;;  %s1587_s28 = sphi %s1702_s28, %s2039_s28   ;;  %s1583_s27 = sphi %s1700_s27, %s2038_s27   ;;  %s1579_s26 = sphi %s1698_s26, %s2037_s26   ;;  %s1575_s25 = sphi %s1696_s25, %s2036_s25   ;;  %s1571_s24 = sphi %s1694_s24, %s2035_s24  }
   0xf   : > { %2006 = sst [smem:[#allocation8_spill]] %s1575_s25  ;;  %s1294_s19 = sadd.s32 4294967294, %s1599_s30  }
  0x10   : > { %2007 = sst [smem:[#allocation9_spill]] %s1579_s26  ;;  %s39_s1 = sadd.s32 1, %s1591_s29 }
  0x11   : > { %2008 = sst [smem:[#allocation10_spill]] %s1587_s28  ;;  %p40_p0 = scmp.ge.s32.totalorder %s39_s1, 4 }
  0x12   : > { %2009 = sst [smem:[#allocation11_spill]] %s1591_s29  ;;  %s42_s20 = sadd.s32 1, %s1595_s0 }
  0x13   : > { %2010 = sst [smem:[#allocation12_spill]] %s1595_s0  ;;  %p456_p1 = scmp.ne.s32.totalorder %s1579_s26, %s1575_s25 }
  0x14   : > { %2011 = sst [smem:[#allocation13_spill]] %s1599_s30  ;;  %p457_p2 = scmp.eq.s32.totalorder %s1293_s18, 7 }
  0x15   : > { %s2043_s1 = smov (%p40_p0, %s39_s1), 0  ;;  %s2045_s20 = smov (!%p40_p0, %s42_s20), %s1595_s0 }
  0x16   : > { %2012 = sst [smem:[#allocation14_spill]] %s2043_s1  ;;  %p1743_p3 = por %p457_p2, %p456_p1 }
  0x17   : > { %p462_p4 = scmp.ne.s32.totalorder %s1575_s25, %s1571_s24  ;;  %p44_p5 = scmp.ge.s32.totalorder %s2045_s20, 2 }
  0x18   : > { %s2013_s21 = scalar_select %p1743_p3, 1, 0 }
  0x19   : > { %p463_p6 = scmp.eq.s32.totalorder %s1294_s19, 7  ;;  %p1297_p7 = scmp.ge.s32.totalorder %s1599_s30, 1 }
  0x1a   : > { %2014 = sst [smem:[#allocation15_spill]] %s2013_s21  ;;  %p564_p8 = scmp.lt.s32.totalorder %s1599_s30, 9 }
  0x1b   : > { %s2047_s20 = smov (%p44_p5, %s2045_s20), 0  ;;  %p1753_p9 = por %p463_p6, %p462_p4 }
  0x1c   : > { %2015 = sst [smem:[#allocation16_spill]] %s2047_s20  ;;  %p565_p10 = pnand %p1297_p7, %p564_p8 }
  0x1d   : > { %s2016_s22 = scalar_select %p1753_p9, 1, 0 }
  0x1e   : > { %s443_s23 = ssub.s32 %s1595_s0, %s2047_s20  ;;  %s446_s18 = sadd.s32 1, %s1579_s26 }
  0x1f   : > { %2017 = sst [smem:[#allocation17_spill]] %s2016_s22  ;;  %p444_p11 = scmp.eq.s32.totalorder %s443_s23, 0 }
  0x20   : > { %568 = sbr.rel (%p565_p10) target bundleno = 1754 (0x6da), region = 88  ;;  %s1990_s19 = sand.u32 (!%p565_p10), 1, %s1575_s25  }
  0x21   : > { %s1761_s1 = scalar_select %p444_p11, %s1579_s26, %s446_s18  }
  0x22   : > { %p643_p12 = scmp.lt.s32.totalorder (!%p565_p10), %s1587_s28, 1  ;;  %s1767_s29 = sshll.u32 (!%p565_p10), %s1990_s19, 3 }
  0x23   : > { %2018 = sst [smem:[#allocation18_spill]] %s1761_s1  ;;  %p647_p13 = scmp.lt.s32.totalorder (!%p565_p10), %s1583_s27, 3 }
  0x24   : > { %s2019_s1 = sld [smem:[#allocation19_spill]] (!%p565_p10)  ;;  %s642_s15 = scalar_lea.vmem (!%p565_p10), [#allocation4], %s1767_s29 }
  0x25   : > { %s644_s22 = scalar_select %p643_p12, %s1587_s28, 1 }
  0x26   : > { %s1772_s20 = scalar_select %p647_p13, %s1583_s27, 3 }
  0x27   : > { %s1299_s23 = sshll.u32 %s644_s22, 3  ;;  %s2020_s17 = sld [smem:[#allocation20_spill]] }
  0x28   : > { %s1385_s24 = sshll.u32 %s1772_s20, 4  ;;  %s662_s0 = scalar_lea.vmem %s1968_s4, %s1772_s20 }
  0x29   : > { %s1792_s12 = scalar_lea.vmem %s1967_s3, %s1385_s24  ;;  %s1801_s18 = scalar_lea.vmem %s1969_s5, %s1385_s24 }
  0x2a   : > { %s1777_s26 = scalar_lea.vmem %s2019_s1, %s1299_s23  ;;  %s670_s19 = scalar_lea.vmem %s1970_s6, %s1772_s20 }
  0x2b   : > { %s1306_s25 = sshll.u32 %s1772_s20, 2  ;;  %p1307_p0 = scmp.ne.s32.totalorder %s1583_s27, 0 }
  0x2c   : > { %s1811_s14 = scalar_lea.vmem %s1971_s7, %s1306_s25 }
  0x2d   : > { %s1783_s21 = scalar_lea.vmem %s2020_s17, %s1385_s24  ;;  %679 = sbr.rel (%p1307_p0) target bundleno = 320 (0x140), region = 92 }
  0x32   : > { %v680_v0 = vld [vmem:[%s1777_s26] sm:$0xff]  ;;  %vm683_vm0 = vcmask 261120   ;;  %v1601_v2 = vmov 0.0   ;;  %v1602_v3 = vmov 32.0  }
  0x33   : > { %v684_v1 = vsel %vm683_vm0, %v680_v0, 0.0  ;;  %722 = vst.msk [vmem:[#allocation3] sm:$0xff] %vm683_vm0, %v1601_v2  ;;  %1481 = vrcp.f32 %v1602_v3  ;;  %v1479_v24 = vld [vmem:[%s1973_s9] ss:$0 sm:$0xff] }
  0x34   : > { %685 = vadd.xlane.f32.xlu0 %v684_v1  ;;  %v1480_v26 = vld [vmem:[%s1974_s10] ss:$0 sm:$0xff] }
  0x39   : > { %v1482_v4 = vpop.eup %1481 }
  0x3a   : > { %v688_v5 = vmul.f32 32.0, %v1482_v4  ;;  %vm692_vm1 = vweird.f32 %v1482_v4 }
  0x3c   : > { %v689_v6 = vsub.f32 1.0, %v688_v5 }
  0x3e   : > { %v690_v7 = vmul.f32 %v1482_v4, %v689_v6 }
  0x40   : > { %v691_v8 = vadd.f32 %v1482_v4, %v690_v7 }
  0x42   : > { %v693_v9 = vsel %vm692_vm1, %v1482_v4, %v691_v8 }
  0xa7   : > { %v686_v10 = vpop.xlane.xlu0 %685 }
  0xa8   : > { %v694_v11 = vmul.f32 %v693_v9, %v686_v10 }
  0xaa   : > { %v695_v12 = vsub.f32 %v680_v0, %v694_v11 }
  0xac   : > { %v696_v13 = vmul.f32 %v695_v12, %v695_v12 }
  0xae   : > { %v697_v14 = vsel %vm683_vm0, %v696_v13, 0.0 }
  0xaf   : > { %698 = vadd.xlane.f32.xlu0 %v697_v14 }
 0x122   : > { %v699_v15 = vpop.xlane.xlu0 %698 }
 0x123   : > { %v700_v16 = vmul.f32 %v699_v15, %v693_v9 }
 0x125   : > { %v701_v17 = vadd.f32 1e-05, %v700_v16 }
 0x127   : > { %1483 = vrsqrt.f32 %v701_v17  ;;  %vm708_vm3 = vweird.f32 %v701_v17 }
 0x12d   : > { %v1484_v18 = vpop.eup %1483 }
 0x12e   : > { %v703_v19 = vmul.f32 %v1484_v18, %v701_v17  ;;  %vm709_vm2 = vweird.f32 %v1484_v18 }
 0x12f   : > { %vm710_vm4 = vmor %vm708_vm3, %vm709_vm2 }
 0x130   : > { %v704_v20 = vmul.f32 %v1484_v18, %v703_v19 }
 0x132   : > { %v705_v21 = vmul.f32 0.5, %v704_v20 }
 0x134   : > { %v706_v22 = vsub.f32 1.5, %v705_v21 }
 0x136   : > { %v707_v23 = vmul.f32 %v1484_v18, %v706_v22 }
 0x138   : > { %v711_v25 = vsel %vm710_vm4, %v1484_v18, %v707_v23 }
 0x139   : > { %v712_v27 = vmul.f32 %v711_v25, %v695_v12 }
 0x13b   : > { %v716_v28 = vmul.f32 %v1479_v24, %v712_v27 }
 0x13d   : > { %v720_v29 = vadd.f32 %v1480_v26, %v716_v28 }
 0x13f   : > { %721 = vst.msk [vmem:[#allocation2] sm:$0xff] %vm683_vm0, %v720_v29 }
 0x140 PF: > { %v1391_v30 = vld [vmem:[%s1792_s12 + $0x8] sm:$0xff]  ;;  %v1390_v31 = vld [vmem:[%s1792_s12] sm:$0xff]  ;;  %vm745_vm5 = vcmask 261120   ;;  %s2021_s17 = scalar_lea.vmem %s1966_s2, %s1772_s20  ;;  %vm866_vm6 = vcmask 1043456   ;;  %vm862_vm7 = vcmask 64512   ;;  %p1338_p1 = scmp.ne.s32.totalorder %s1583_s27, 3 }
 0x141   : > { %788 = vmatpush.bf16.msra.mxu1 %v1391_v30  ;;  %v1389_v34 = vld [vmem:[%s1783_s21 + $0x8] sm:$0xff]  ;;  %v1388_v35 = vld [vmem:[%s1783_s21] sm:$0xff]  ;;  %s2022_s11 = sld [smem:[#allocation21_spill]] (!%p1338_p1) }
 0x142   : > { %755 = vmatpush.bf16.msra.mxu0 %v1389_v34  ;;  %v1485_v36 = vld [vmem:[%s662_s0] ss:$0 sm:$0xff]  ;;  %v1393_v42 = vld [vmem:[%s1801_s18 + $0x8] sm:$0xff]  ;;  %s2023_s22 = sld [smem:[#allocation22_spill]] (!%p1338_p1) }
 0x143   : > { %821 = vmatpush.bf16.msra.mxu2 %v1393_v42  ;;  %v1392_v43 = vld [vmem:[%s1801_s18] sm:$0xff]  ;;  %v915_v9 = vld [vmem:[#allocation3] sm:$0xff]  ;;  %s2024_s12 = sld [smem:[#allocation24_spill]] (!%p1338_p1) }
 0x144   : > { %v1486_v44 = vld [vmem:[%s2021_s17] ss:$0 sm:$0xff]  ;;  %s2025_s24 = sld [smem:[#allocation23_spill]] (!%p1338_p1) }
 0x145   : > { %789 = vmatpush.bf16.msra.mxu1 %v1390_v31  ;;  %v1487_v50 = vld [vmem:[%s670_s19] ss:$0 sm:$0xff]  ;;  %s2026_s17 = sld [smem:[#allocation25_spill]] (!%p1338_p1) }
 0x146   : > { %v723_v32 = vld [vmem:[#allocation2] sm:$0xff]  ;;  %756 = vmatpush.bf16.msra.mxu0 %v1388_v35 }
 0x147   : > { %v724_v33 = vpack.c.bf16 %v723_v32, %v723_v32  ;;  %822 = vmatpush.bf16.msra.mxu2 %v1392_v43  ;;  %v917_v1 = vld [vmem:[%s1811_s14] sm:$0xf] }
 0x148   : > { %v922_v2 = vsel %vm866_vm6, %v917_v1, 0 }
 0x149   : > { %1325 = vmatmul.msk.bf16.vlgmr.msra.gmra.mxu1 %vm745_vm5, %v724_v33  ;;  %1316 = vmatmul.msk.bf16.vlgmr.msra.gmra.mxu0 %vm745_vm5, %v724_v33 }
 0x14a   : > { %1334 = vmatmul.msk.bf16.vlgmr.msra.gmra.mxu2 %vm745_vm5, %v724_v33  ;;  %931 = vmatpush.bf16.msrb.mxu0 %v922_v2 }
 0x1c6   : > { %v791_v37 = vpop.f32.mrf.mxu1  ;;  %v758_v40 = vpop.f32.mrf.mxu0 }
 0x1c7   : > { %v792_v38 = vadd.f32 %v1485_v36, %v791_v37  ;;  %v759_v45 = vadd.f32 %v1486_v44, %v758_v40 }
 0x1c9   : > { %829 = vxpose.xlu0.b32.start.end [1/1] (short) (narrow) %v792_v38, 8  ;;  %v828_v48 = vpack.c.bf16 %v759_v45, %v759_v45 }
 0x1cd   : > { %v824_v51 = vpop.f32.mrf.mxu2 }
 0x1ce   : > { %v793_v39 = vpop.f32.mrf.mxu1  ;;  %v760_v41 = vpop.f32.mrf.mxu0  ;;  %v825_v52 = vadd.f32 %v1487_v50, %v824_v51 }
 0x1d0   : > { %v893_v53 = vpack.c.bf16 %v825_v52, %v825_v52 }
 0x1d2   : > { %v898_v54 = vsel %vm866_vm6, %v893_v53, 0 }
 0x1d5   : > { %v826_v55 = vpop.f32.mrf.mxu2 }
 0x26d   : > { %v845_v46 = vpop.trf.xlu0 }
 0x26e   : > { %v861_v47 = vpack.c.bf16 %v845_v46, %v845_v46 }
 0x270   : > { %v868_v49 = vsel %vm866_vm6, %v861_v47, 0 }
 0x271   : > { %877 = vmatpush.bf16.msra.mxu3 %v868_v49 }
 0x274   : > { %1335 = vmatmul.msk.bf16.vlgmr.msra.gmra.mxu3 %vm862_vm7, %v828_v48 }
 0x275   : > { %907 = vmatpush.bf16.msrb.mxu3 %v898_v54 }
 0x2f7   : > { %v879_v56 = vpop.f32.mrf.mxu3 }
 0x2f8   : > { %v883_v57 = vsel %vm862_vm7, %v879_v56, -inf }
 0x2f9   : > { %884 = vmax.xlane.f32.xlu0 %v883_v57 }
 0x2ff   : > { %v881_v58 = vpop.f32.mrf.mxu3 }
 0x36c   : > { %v885_v59 = vpop.xlane.xlu0 %884 }
 0x36d   : > { %v886_v60 = vsub.f32 %v879_v56, %v885_v59 }
 0x36f   : > { %v887_v61 = vmul.f32 1.442695, %v886_v60 }
 0x371   : > { %1488 = vpow2.f32 %v887_v61 }
 0x377   : > { %v1489_v62 = vpop.eup %1488 }
 0x378   : > { %v889_v63 = vsel %vm862_vm7, %v1489_v62, 0.0  ;;  %v892_v0 = vpack.c.bf16 %v1489_v62, %v1489_v62 }
 0x379   : > { %890 = vadd.xlane.f32.xlu1 %v889_v63 }
 0x37a   : > { %1336 = vmatmul.msk.bf16.vlgmr.msrb.gmra.mxu3 %vm862_vm7, %v892_v0 }
 0x3ec   : > { %v891_v3 = vpop.xlane.xlu1 %890 }
 0x3ed   : > { %1490 = vrcp.f32 %v891_v3 }
 0x3f3   : > { %v1491_v4 = vpop.eup %1490 }
 0x3fd   : > { %v909_v5 = vpop.f32.mrf.mxu3 }
 0x3fe   : > { %v914_v6 = vmul.f32 %v1491_v4, %v909_v5 }
 0x400   : > { %v916_v7 = vpack.c.bf16 %v914_v6, %v914_v6 }
 0x402   : > { %1337 = vmatmul.msk.bf16.vlgmr.msrb.gmra.mxu0 %vm862_vm7, %v916_v7 }
 0x405   : > { %v911_v8 = vpop.f32.mrf.mxu3 }
 0x47f   : > { %v933_v10 = vpop.f32.mrf.mxu0 }
 0x480   : > { %v937_v11 = vadd.f32 %v933_v10, %v915_v9 }
 0x482   : > { %938 = vst.msk [vmem:[#allocation3] sm:$0xff] %vm745_vm5, %v937_v11 }
 0x483   : > { %942 = sbr.rel (%p1338_p1) target bundleno = 1732 (0x6c4), region = 96 }
 0x487   : > { %v935_v12 = vpop.f32.mrf.mxu0 }
 0x488   : > { %v943_v13 = vld [vmem:[%s1777_s26] sm:$0xff]  ;;  %v1603_v19 = vmov 32.0   ;;  %v1395_v31 = vld [vmem:[%s1977_s13 + $0x8] sm:$0xff]  ;;  %v1403_v49 = vld [vmem:[%s2024_s12 + $0x38] sm:$0xff] }
 0x489   : > { %v944_v14 = vld [vmem:[#allocation3] sm:$0xff]  ;;  %v1492_v16 = vld [vmem:[%s1972_s8] ss:$0 sm:$0xff]  ;;  %1497 = vrcp.f32 %v1603_v19  ;;  %1020 = vmatpush.bf16.msra.mxu0 %v1395_v31  ;;  %1117 = vmatpush.bf16.msra.mxu1 %v1403_v49  ;;  %v1402_v50 = vld [vmem:[%s2024_s12 + $0x30] sm:$0xff] }
 0x48a   : > { %v945_v15 = vadd.f32 %v944_v14, %v943_v13  ;;  %v1394_v32 = vld [vmem:[%s1977_s13] sm:$0xff]  ;;  %v1401_v51 = vld [vmem:[%s2024_s12 + $0x28] sm:$0xff]  ;;  %v1399_v53 = vld [vmem:[%s2024_s12 + $0x18] sm:$0xff] }
 0x48b   : > { %v1493_v42 = vld [vmem:[%s2022_s11] ss:$0 sm:$0xff]  ;;  %v1398_v54 = vld [vmem:[%s2024_s12 + $0x10] sm:$0xff]  ;;  %v1397_v55 = vld [vmem:[%s2024_s12 + $0x8] sm:$0xff] }
 0x48c   : > { %v1865_v17 = vadd.f32 %v1492_v16, %v945_v15  ;;  %v1494_v45 = vld [vmem:[%s2023_s22] ss:$0 sm:$0xff] }
 0x48d   : > { %1021 = vmatpush.bf16.msra.mxu0 %v1394_v32  ;;  %1118 = vmatpush.bf16.msra.mxu1 %v1402_v50  ;;  %v1400_v52 = vld [vmem:[%s2024_s12 + $0x20] sm:$0xff] }
 0x48e   : > { %v953_v18 = vsel %vm745_vm5, %v1865_v17, 0.0  ;;  %v1495_v56 = vld [vmem:[%s2025_s24] ss:$0 sm:$0xff] }
 0x48f   : > { %954 = vadd.xlane.f32.xlu0 %v953_v18  ;;  %v1498_v20 = vpop.eup %1497  ;;  %v1396_v57 = vld [vmem:[%s2024_s12] sm:$0xff] }
 0x490   : > { %v957_v21 = vmul.f32 32.0, %v1498_v20  ;;  %vm961_vm8 = vweird.f32 %v1498_v20  ;;  %v1496_v13 = vld [vmem:[%s2026_s17] ss:$0 sm:$0xff] }
 0x491   : > { %1119 = vmatpush.bf16.msra.mxu1 %v1401_v51 }
 0x492   : > { %v958_v22 = vsub.f32 1.0, %v957_v21 }
 0x494   : > { %v959_v23 = vmul.f32 %v1498_v20, %v958_v22 }
 0x495   : > { %1120 = vmatpush.bf16.msra.mxu1 %v1400_v52 }
 0x496   : > { %v960_v24 = vadd.f32 %v1498_v20, %v959_v23 }
 0x498   : > { %v962_v25 = vsel %vm961_vm8, %v1498_v20, %v960_v24 }
 0x499   : > { %1121 = vmatpush.bf16.msra.mxu1 %v1399_v53 }
 0x49d   : > { %1122 = vmatpush.bf16.msra.mxu1 %v1398_v54 }
 0x4a1   : > { %1123 = vmatpush.bf16.msra.mxu1 %v1397_v55 }
 0x4a5   : > { %1124 = vmatpush.bf16.msra.mxu1 %v1396_v57 }
 0x502   : > { %v955_v26 = vpop.xlane.xlu0 %954 }
 0x503   : > { %v963_v27 = vmul.f32 %v962_v25, %v955_v26 }
 0x505   : > { %v964_v28 = vsub.f32 %v1865_v17, %v963_v27 }
 0x507   : > { %v965_v29 = vmul.f32 %v964_v28, %v964_v28 }
 0x509   : > { %v966_v30 = vsel %vm745_vm5, %v965_v29, 0.0 }
 0x50a   : > { %967 = vadd.xlane.f32.xlu0 %v966_v30 }
 0x57d   : > { %v968_v33 = vpop.xlane.xlu0 %967 }
 0x57e   : > { %v969_v34 = vmul.f32 %v968_v33, %v962_v25 }
 0x580   : > { %v970_v35 = vadd.f32 1e-05, %v969_v34 }
 0x582   : > { %1499 = vrsqrt.f32 %v970_v35  ;;  %vm977_vm10 = vweird.f32 %v970_v35 }
 0x588   : > { %v1500_v36 = vpop.eup %1499 }
 0x589   : > { %v972_v37 = vmul.f32 %v1500_v36, %v970_v35  ;;  %vm978_vm9 = vweird.f32 %v1500_v36 }
 0x58a   : > { %vm979_vm11 = vmor %vm977_vm10, %vm978_vm9 }
 0x58b   : > { %v973_v38 = vmul.f32 %v1500_v36, %v972_v37 }
 0x58d   : > { %v974_v39 = vmul.f32 0.5, %v973_v38 }
 0x58f   : > { %v975_v40 = vsub.f32 1.5, %v974_v39 }
 0x591   : > { %v976_v41 = vmul.f32 %v1500_v36, %v975_v40 }
 0x593   : > { %v980_v43 = vsel %vm979_vm11, %v1500_v36, %v976_v41 }
 0x594   : > { %v981_v44 = vmul.f32 %v980_v43, %v964_v28 }
 0x596   : > { %v985_v46 = vmul.f32 %v1493_v42, %v981_v44 }
 0x598   : > { %v989_v47 = vadd.f32 %v1494_v45, %v985_v46 }
 0x59a   : > { %v990_v48 = vpack.c.bf16 %v989_v47, %v989_v47 }
 0x59c   : > { %1347 = vmatmul.msk.bf16.vlgmr.msra.gmra.mxu0 %vm745_vm5, %v990_v48 }
 0x619   : > { %v1023_v58 = vpop.f32.mrf.mxu0 }
 0x61a   : > { %v1024_v59 = vadd.f32 %v1495_v56, %v1023_v58 }
 0x61c   : > { %v1348_v60 = vmul.f32 -1.702, %v1024_v59 }
 0x61e   : > { %v1029_v61 = vmul.f32 1.442695, %v1348_v60 }
 0x620   : > { %1501 = vpow2.f32 %v1029_v61 }
 0x621   : > { %v1025_v62 = vpop.f32.mrf.mxu0 }
 0x626   : > { %v1502_v63 = vpop.eup %1501 }
 0x627   : > { %v1031_v0 = vadd.f32 1.0, %v1502_v63 }
 0x629   : > { %1503 = vrcp.f32 %v1031_v0  ;;  %v1043_v4 = vand.u32 2147483648, %v1031_v0  ;;  %v1041_v6 = vand.u32 2147483647, %v1031_v0  ;;  %vm1037_vm13 = vweird.f32 %v1031_v0 }
 0x62b   : > { %v1044_v8 = vor.u32 1.1754944e-38, %v1043_v4  ;;  %vm1042_vm15 = vcmp.eq.f32.partialorder %v1041_v6, 8.507059e+37 }
 0x62f   : > { %v1504_v1 = vpop.eup %1503 }
 0x630   : > { %v1033_v2 = vmul.f32 %v1504_v1, %v1031_v0  ;;  %vm1038_vm12 = vweird.f32 %v1504_v1 }
 0x631   : > { %vm1039_vm14 = vmor %vm1037_vm13, %vm1038_vm12 }
 0x632   : > { %v1034_v3 = vsub.f32 1.0, %v1033_v2 }
 0x634   : > { %v1035_v5 = vmul.f32 %v1504_v1, %v1034_v3 }
 0x636   : > { %v1036_v7 = vadd.f32 %v1504_v1, %v1035_v5 }
 0x638   : > { %v1040_v9 = vsel %vm1039_vm14, %v1504_v1, %v1036_v7 }
 0x639   : > { %v1045_v10 = vsel %vm1042_vm15, %v1044_v8, %v1040_v9 }
 0x63a   : > { %v1047_v11 = vmul.f32 %v1045_v10, %v1024_v59 }
 0x63c   : > { %v1048_v12 = vpack.c.bf16 %v1047_v11, %v1047_v11 }
 0x63e   : > { %1125 = vmatmul.bf16.vlgmr.msra.gmra.mxu1 %v1048_v12 }
 0x6bb   : > { %v1126_v14 = vpop.f32.mrf.mxu1 }
 0x6bc   : > { %v1127_v15 = vadd.f32 %v1496_v13, %v1126_v14 }
 0x6be   : > { %v1130_v16 = vadd.f32 %v1127_v15, %v1865_v17 }
 0x6c0   : > { %1131 = vst.msk [vmem:[%s642_s15] sm:$0xff] %vm745_vm5, %v1130_v16 }
 0x6c3   : > { %v1128_v18 = vpop.f32.mrf.mxu1 }
 0x6c4 PF: > { %s2027_s0 = sld [smem:[#allocation10_spill]]  ;;  %s1145_s28 = sshll.u32 %s642_s15, 4  ;;  %s1146_s28 = int_to_ptr.vmem [resolvable:$true] %s1145_s28 }
 0x6c5   : > { %s2028_s18 = sld [smem:[#allocation8_spill]] }
 0x6c6   : > { %s2030_s19 = sld [smem:[#allocation26_spill]] }
 0x6ca   : > { %s1382_s30 = sshll.u32 %s2027_s0, 3 }
 0x6cb   : > { %s2031_s11 = sand.u32 1, %s2028_s18  }
 0x6cc   : > { %s1143_s25 = scalar_lea.hbm %s2030_s19, %s1382_s30  ;;  %s1133_s16 = scalar_lea.sflag [#allocation5], %s2031_s11 }
 0x6cd   : > { %s1147_s14 = sshll.u32 %s1143_s25, 4  ;;  %s1525_s21 = scalar_lea.hbm %s2030_s19, 16  ;;  %s1148_s14 = int_to_ptr.hbm [resolvable:$true] %s1147_s14 }
 0x6ce   : > { %s1519_s24 = sshra.s32 %s1148_s14, 4  ;;  %s1520_s24 = int_to_ptr.hbm [resolvable:$true] %s1519_s24 }
 0x6cf   : > { %s1521_s22 = scalar_lea.hbm %s1520_s24, 8  ;;  %p1526_p6 = scmp.lt.s32.totalorder %s1520_s24, %s2030_s19 }
 0x6d0   : > { %p1522_p2 = scmp.ne.s32.totalorder %s1520_s24, %s1521_s22  ;;  %p1527_p7 = scmp.lt.s32.totalorder %s1525_s21, %s1521_s22 }
 0x6d2   : > { %p1523_p4 = pnand %p1522_p2, %p1743_p3  ;;  %p1528_p8 = por %p1527_p7, %p1526_p6 }
 0x6d4   : > { %p1524_p5 = pneg %p1523_p4 }
 0x6d6   : > { %p1529_p10 = pnand %p1528_p8, %p1524_p5 }
 0x6d8   : > { %1532 = shalt.err (!%p1529_p10)
}
 0x6d9   : > { %1404 = dma.vmem_to_hbm [thread:$0]  (%p1743_p3), %s1146_s28, 128, %s1148_s14, %s1133_s16  }
 0x6da PF: > { %s2032_s29 = sld [smem:[#allocation13_spill]] }
 0x6db   : > { %s2033_s15 = sld [smem:[#allocation7_spill]] }
 0x6e0   : > { %p1410_p11 = scmp.ge.s32.totalorder %s2032_s29, 2 }
 0x6e1   : > { %s1159_s30 = sand.u32 1, %s2033_s15  }
 0x6e2   : > { %p1407_p12 = pnand %p1410_p11, %p1753_p9  ;;  %s1160_s26 = scalar_lea.sflag [#allocation5], %s1159_s30 }
 0x6e4   : > { %p1408_p13 = pneg %p1407_p12 }
 0x6e6   : > { %1566 = dma.done.wait (%p1408_p13), %s1160_s26, 128  }
 0x6e7   : > { %1568 = vsyncadd (%p1408_p13), %s1160_s26, 4294967168  ;;  %s30_s30 = sadd.s32 1, %s2032_s29   ;;  %s2035_s24 = sld [smem:[#allocation8_spill]] }
 0x6e8   : > { %p27_p0 = scmp.ge.s32.totalorder %s30_s30, 10   ;;  %s2036_s25 = sld [smem:[#allocation9_spill]] }
 0x6e9   : > { %s2037_s26 = sld [smem:[#allocation18_spill]] }
 0x6ea   : > { %s2038_s27 = sld [smem:[#allocation11_spill]]  ;;  %29 = sbr.rel (!%p27_p0) target bundleno = 14 (0xe), region = 152 }
 0x6eb   : > { %s2039_s28 = sld [smem:[#allocation12_spill]] }
 0x6ec   : > { %s2040_s29 = sld [smem:[#allocation14_spill]] }
 0x6ed   : > { %s2041_s0 = sld [smem:[#allocation16_spill]] }
 0x6ef   :  { %1166 = vsyncpa [#allocation5], 1 }
 0x6f0   :  { %1168 = vsyncpa [#allocation5 + $0x1], 1 }

// kernel: tpu_custom_call.1
= control target key start
LH: loop header
LB: loop body
LE: loop exit
PB: predicated region body
PF: predicated region fallthrough
CT: control target
= control target key end

     0   :  { %s1964_s0 = inlined_call_operand.vmem [shape: f32[2,8,32], index: 0, kind: input, shape index: {}]   ;;  %s1965_s1 = inlined_call_operand.vmem [shape: bf16[4,32,8], index: 1, kind: input, shape index: {}]   ;;  %s1966_s2 = inlined_call_operand.vmem [shape: f32[4,1,8], index: 2, kind: input, shape index: {}]   ;;  %s1967_s3 = inlined_call_operand.vmem [shape: bf16[4,32,8], index: 3, kind: input, shape index: {}]   ;;  %s1968_s4 = inlined_call_operand.vmem [shape: f32[4,1,8], index: 4, kind: input, shape index: {}]   ;;  %s1969_s5 = inlined_call_operand.vmem [shape: bf16[4,32,8], index: 5, kind: input, shape index: {}]   ;;  %s1970_s6 = inlined_call_operand.vmem [shape: f32[4,1,8], index: 6, kind: input, shape index: {}]   ;;  %s1971_s7 = inlined_call_operand.vmem [shape: bf16[4,8,32], index: 7, kind: input, shape index: {}]   ;;  %s1972_s8 = inlined_call_operand.vmem [shape: f32[1,32], index: 8, kind: input, shape index: {}]   ;;  %s1973_s9 = inlined_call_operand.vmem [shape: f32[1,32], index: 9, kind: input, shape index: {}]   ;;  %s1974_s10 = inlined_call_operand.vmem [shape: f32[1,32], index: 10, kind: input, shape index: {}]   ;;  %s1975_s11 = inlined_call_operand.vmem [shape: f32[1,32], index: 11, kind: input, shape index: {}]   ;;  %s1976_s12 = inlined_call_operand.vmem [shape: f32[1,32], index: 12, kind: input, shape index: {}]   ;;  %s1977_s13 = inlined_call_operand.vmem [shape: bf16[32,128], index: 13, kind: input, shape index: {}]   ;;  %s1978_s14 = inlined_call_operand.vmem [shape: f32[1,128], index: 14, kind: input, shape index: {}]   ;;  %s1979_s15 = inlined_call_operand.vmem [shape: bf16[128,32], index: 15, kind: input, shape index: {}]   ;;  %s1980_s16 = inlined_call_operand.vmem [shape: f32[1,32], index: 16, kind: input, shape index: {}]   ;;  %s1981_s17 = inlined_call_operand.hbm [shape: f32[2,8,32], index: 17, kind: output, shape index: {}]  }
   0x1   :  { %1997 = sst [smem:[#allocation19_spill]] %s1964_s0 }
   0x2   :  { %1998 = sst [smem:[#allocation20_spill]] %s1965_s1 }
   0x3   :  { %1999 = sst [smem:[#allocation21_spill]] %s1975_s11 }
   0x4   :  { %2000 = sst [smem:[#allocation22_spill]] %s1976_s12 }
   0x5   :  { %2001 = sst [smem:[#allocation23_spill]] %s1978_s14 }
   0x6   :  { %2002 = sst [smem:[#allocation24_spill]] %s1979_s15 }
   0x7   :  { %2003 = sst [smem:[#allocation25_spill]] %s1980_s16 }
   0x8   :  { %2004 = sst [smem:[#allocation26_spill]] %s1981_s17 }
   0x9   :  { %22 = vsyncpa [#allocation5], 0 }
   0xa   :  { %24 = vsyncpa [#allocation5 + $0x1], 0  ;;  %s1694_s24 = smov 0   ;;  %s1696_s25 = smov 0  }
   0xb   :  { %s1698_s26 = smov 0   ;;  %s1700_s27 = smov 0  }
   0xc   :  { %s1702_s28 = smov 0   ;;  %s1704_s29 = smov 0  }
   0xd   :  { %s1706_s0 = smov 0   ;;  %s1708_s30 = smov 0  }
   0xe LB: > { %2005 = sst [smem:[#allocation7_spill]] %s1571_s24  ;;  %s1293_s18 = sadd.s32 4294967295, %s1599_s30   ;;  %s1599_s30 = sphi %s1708_s30, %s30_s30   ;;  %s1595_s0 = sphi %s1706_s0, %s2041_s0   ;;  %s1591_s29 = sphi %s1704_s29, %s2040_s29   ;;  %s1587_s28 = sphi %s1702_s28, %s2039_s28   ;;  %s1583_s27 = sphi %s1700_s27, %s2038_s27   ;;  %s1579_s26 = sphi %s1698_s26, %s2037_s26   ;;  %s1575_s25 = sphi %s1696_s25, %s2036_s25   ;;  %s1571_s24 = sphi %s1694_s24, %s2035_s24  }
   0xf   : > { %2006 = sst [smem:[#allocation8_spill]] %s1575_s25  ;;  %s1294_s19 = sadd.s32 4294967294, %s1599_s30  }
  0x10   : > { %2007 = sst [smem:[#allocation9_spill]] %s1579_s26  ;;  %s39_s1 = sadd.s32 1, %s1591_s29 }
  0x11   : > { %2008 = sst [smem:[#allocation10_spill]] %s1587_s28  ;;  %p40_p0 = scmp.ge.s32.totalorder %s39_s1, 4 }
  0x12   : > { %2009 = sst [smem:[#allocation11_spill]] %s1591_s29  ;;  %s42_s20 = sadd.s32 1, %s1595_s0 }
  0x13   : > { %2010 = sst [smem:[#allocation12_spill]] %s1595_s0  ;;  %p456_p1 = scmp.ne.s32.totalorder %s1579_s26, %s1575_s25 }
  0x14   : > { %2011 = sst [smem:[#allocation13_spill]] %s1599_s30  ;;  %p457_p2 = scmp.eq.s32.totalorder %s1293_s18, 7 }
  0x15   : > { %s2043_s1 = smov (%p40_p0, %s39_s1), 0  ;;  %s2045_s20 = smov (!%p40_p0, %s42_s20), %s1595_s0 }
  0x16   : > { %2012 = sst [smem:[#allocation14_spill]] %s2043_s1  ;;  %p1743_p3 = por %p457_p2, %p456_p1 }
  0x17   : > { %p462_p4 = scmp.ne.s32.totalorder %s1575_s25, %s1571_s24  ;;  %p44_p5 = scmp.ge.s32.totalorder %s2045_s20, 2 }
  0x18   : > { %s2013_s21 = scalar_select %p1743_p3, 1, 0 }
  0x19   : > { %p463_p6 = scmp.eq.s32.totalorder %s1294_s19, 7  ;;  %p1297_p7 = scmp.ge.s32.totalorder %s1599_s30, 1 }
  0x1a   : > { %2014 = sst [smem:[#allocation15_spill]] %s2013_s21  ;;  %p564_p8 = scmp.lt.s32.totalorder %s1599_s30, 9 }
  0x1b   : > { %s2047_s20 = smov (%p44_p5, %s2045_s20), 0  ;;  %p1753_p9 = por %p463_p6, %p462_p4 }
  0x1c   : > { %2015 = sst [smem:[#allocation16_spill]] %s2047_s20  ;;  %p565_p10 = pnand %p1297_p7, %p564_p8 }
  0x1d   : > { %s2016_s22 = scalar_select %p1753_p9, 1, 0 }
  0x1e   : > { %s443_s23 = ssub.s32 %s1595_s0, %s2047_s20  ;;  %s446_s18 = sadd.s32 1, %s1579_s26 }
  0x1f   : > { %2017 = sst [smem:[#allocation17_spill]] %s2016_s22  ;;  %p444_p11 = scmp.eq.s32.totalorder %s443_s23, 0 }
  0x20   : > { %568 = sbr.rel (%p565_p10) target bundleno = 1754 (0x6da), region = 88  ;;  %s1990_s19 = sand.u32 (!%p565_p10), 1, %s1575_s25  }
  0x21   : > { %s1761_s1 = scalar_select %p444_p11, %s1579_s26, %s446_s18  }
  0x22   : > { %p643_p12 = scmp.lt.s32.totalorder (!%p565_p10), %s1587_s28, 1  ;;  %s1767_s29 = sshll.u32 (!%p565_p10), %s1990_s19, 3 }
  0x23   : > { %2018 = sst [smem:[#allocation18_spill]] %s1761_s1  ;;  %p647_p13 = scmp.lt.s32.totalorder (!%p565_p10), %s1583_s27, 3 }
  0x24   : > { %s2019_s1 = sld [smem:[#allocation19_spill]] (!%p565_p10)  ;;  %s642_s15 = scalar_lea.vmem (!%p565_p10), [#allocation4], %s1767_s29 }
  0x25   : > { %s644_s22 = scalar_select %p643_p12, %s1587_s28, 1 }
  0x26   : > { %s1772_s20 = scalar_select %p647_p13, %s1583_s27, 3 }
  0x27   : > { %s1299_s23 = sshll.u32 %s644_s22, 3  ;;  %s2020_s17 = sld [smem:[#allocation20_spill]] }
  0x28   : > { %s1385_s24 = sshll.u32 %s1772_s20, 4  ;;  %s662_s0 = scalar_lea.vmem %s1968_s4, %s1772_s20 }
  0x29   : > { %s1792_s12 = scalar_lea.vmem %s1967_s3, %s1385_s24  ;;  %s1801_s18 = scalar_lea.vmem %s1969_s5, %s1385_s24 }
  0x2a   : > { %s1777_s26 = scalar_lea.vmem %s2019_s1, %s1299_s23  ;;  %s670_s19 = scalar_lea.vmem %s1970_s6, %s1772_s20 }
  0x2b   : > { %s1306_s25 = sshll.u32 %s1772_s20, 2  ;;  %p1307_p0 = scmp.ne.s32.totalorder %s1583_s27, 0 }
  0x2c   : > { %s1811_s14 = scalar_lea.vmem %s1971_s7, %s1306_s25 }
  0x2d   : > { %s1783_s21 = scalar_lea.vmem %s2020_s17, %s1385_s24  ;;  %679 = sbr.rel (%p1307_p0) target bundleno = 320 (0x140), region = 92 }
  0x32   : > { %v680_v0 = vld [vmem:[%s1777_s26] sm:$0xff]  ;;  %vm683_vm0 = vcmask 261120   ;;  %v1601_v2 = vmov 0.0   ;;  %v1602_v3 = vmov 32.0  }
  0x33   : > { %v684_v1 = vsel %vm683_vm0, %v680_v0, 0.0  ;;  %722 = vst.msk [vmem:[#allocation3] sm:$0xff] %vm683_vm0, %v1601_v2  ;;  %1481 = vrcp.f32 %v1602_v3  ;;  %v1479_v24 = vld [vmem:[%s1973_s9] ss:$0 sm:$0xff] }
  0x34   : > { %685 = vadd.xlane.f32.xlu0 %v684_v1  ;;  %v1480_v26 = vld [vmem:[%s1974_s10] ss:$0 sm:$0xff] }
  0x39   : > { %v1482_v4 = vpop.eup %1481 }
  0x3a   : > { %v688_v5 = vmul.f32 32.0, %v1482_v4  ;;  %vm692_vm1 = vweird.f32 %v1482_v4 }
  0x3c   : > { %v689_v6 = vsub.f32 1.0, %v688_v5 }
  0x3e   : > { %v690_v7 = vmul.f32 %v1482_v4, %v689_v6 }
  0x40   : > { %v691_v8 = vadd.f32 %v1482_v4, %v690_v7 }
  0x42   : > { %v693_v9 = vsel %vm692_vm1, %v1482_v4, %v691_v8 }
  0xa7   : > { %v686_v10 = vpop.xlane.xlu0 %685 }
  0xa8   : > { %v694_v11 = vmul.f32 %v693_v9, %v686_v10 }
  0xaa   : > { %v695_v12 = vsub.f32 %v680_v0, %v694_v11 }
  0xac   : > { %v696_v13 = vmul.f32 %v695_v12, %v695_v12 }
  0xae   : > { %v697_v14 = vsel %vm683_vm0, %v696_v13, 0.0 }
  0xaf   : > { %698 = vadd.xlane.f32.xlu0 %v697_v14 }
 0x122   : > { %v699_v15 = vpop.xlane.xlu0 %698 }
 0x123   : > { %v700_v16 = vmul.f32 %v699_v15, %v693_v9 }
 0x125   : > { %v701_v17 = vadd.f32 1e-05, %v700_v16 }
 0x127   : > { %1483 = vrsqrt.f32 %v701_v17  ;;  %vm708_vm3 = vweird.f32 %v701_v17 }
 0x12d   : > { %v1484_v18 = vpop.eup %1483 }
 0x12e   : > { %v703_v19 = vmul.f32 %v1484_v18, %v701_v17  ;;  %vm709_vm2 = vweird.f32 %v1484_v18 }
 0x12f   : > { %vm710_vm4 = vmor %vm708_vm3, %vm709_vm2 }
 0x130   : > { %v704_v20 = vmul.f32 %v1484_v18, %v703_v19 }
 0x132   : > { %v705_v21 = vmul.f32 0.5, %v704_v20 }
 0x134   : > { %v706_v22 = vsub.f32 1.5, %v705_v21 }
 0x136   : > { %v707_v23 = vmul.f32 %v1484_v18, %v706_v22 }
 0x138   : > { %v711_v25 = vsel %vm710_vm4, %v1484_v18, %v707_v23 }
 0x139   : > { %v712_v27 = vmul.f32 %v711_v25, %v695_v12 }
 0x13b   : > { %v716_v28 = vmul.f32 %v1479_v24, %v712_v27 }
 0x13d   : > { %v720_v29 = vadd.f32 %v1480_v26, %v716_v28 }
 0x13f   : > { %721 = vst.msk [vmem:[#allocation2] sm:$0xff] %vm683_vm0, %v720_v29 }
 0x140 PF: > { %v1391_v30 = vld [vmem:[%s1792_s12 + $0x8] sm:$0xff]  ;;  %v1390_v31 = vld [vmem:[%s1792_s12] sm:$0xff]  ;;  %vm745_vm5 = vcmask 261120   ;;  %s2021_s17 = scalar_lea.vmem %s1966_s2, %s1772_s20  ;;  %vm866_vm6 = vcmask 1043456   ;;  %vm862_vm7 = vcmask 64512   ;;  %p1338_p1 = scmp.ne.s32.totalorder %s1583_s27, 3 }
 0x141   : > { %788 = vmatpush.bf16.msra.mxu1 %v1391_v30  ;;  %v1389_v34 = vld [vmem:[%s1783_s21 + $0x8] sm:$0xff]  ;;  %v1388_v35 = vld [vmem:[%s1783_s21] sm:$0xff]  ;;  %s2022_s11 = sld [smem:[#allocation21_spill]] (!%p1338_p1) }
 0x142   : > { %755 = vmatpush.bf16.msra.mxu0 %v1389_v34  ;;  %v1485_v36 = vld [vmem:[%s662_s0] ss:$0 sm:$0xff]  ;;  %v1393_v42 = vld [vmem:[%s1801_s18 + $0x8] sm:$0xff]  ;;  %s2023_s22 = sld [smem:[#allocation22_spill]] (!%p1338_p1) }
 0x143   : > { %821 = vmatpush.bf16.msra.mxu2 %v1393_v42  ;;  %v1392_v43 = vld [vmem:[%s1801_s18] sm:$0xff]  ;;  %v915_v9 = vld [vmem:[#allocation3] sm:$0xff]  ;;  %s2024_s12 = sld [smem:[#allocation24_spill]] (!%p1338_p1) }
 0x144   : > { %v1486_v44 = vld [vmem:[%s2021_s17] ss:$0 sm:$0xff]  ;;  %s2025_s24 = sld [smem:[#allocation23_spill]] (!%p1338_p1) }
 0x145   : > { %789 = vmatpush.bf16.msra.mxu1 %v1390_v31  ;;  %v1487_v50 = vld [vmem:[%s670_s19] ss:$0 sm:$0xff]  ;;  %s2026_s17 = sld [smem:[#allocation25_spill]] (!%p1338_p1) }
 0x146   : > { %v723_v32 = vld [vmem:[#allocation2] sm:$0xff]  ;;  %756 = vmatpush.bf16.msra.mxu0 %v1388_v35 }
 0x147   : > { %v724_v33 = vpack.c.bf16 %v723_v32, %v723_v32  ;;  %822 = vmatpush.bf16.msra.mxu2 %v1392_v43  ;;  %v917_v1 = vld [vmem:[%s1811_s14] sm:$0xf] }
 0x148   : > { %v922_v2 = vsel %vm866_vm6, %v917_v1, 0 }
 0x149   : > { %1325 = vmatmul.msk.bf16.vlgmr.msra.gmra.mxu1 %vm745_vm5, %v724_v33  ;;  %1316 = vmatmul.msk.bf16.vlgmr.msra.gmra.mxu0 %vm745_vm5, %v724_v33 }
 0x14a   : > { %1334 = vmatmul.msk.bf16.vlgmr.msra.gmra.mxu2 %vm745_vm5, %v724_v33  ;;  %931 = vmatpush.bf16.msrb.mxu0 %v922_v2 }
 0x1c6   : > { %v791_v37 = vpop.f32.mrf.mxu1  ;;  %v758_v40 = vpop.f32.mrf.mxu0 }
 0x1c7   : > { %v792_v38 = vadd.f32 %v1485_v36, %v791_v37  ;;  %v759_v45 = vadd.f32 %v1486_v44, %v758_v40 }
 0x1c9   : > { %829 = vxpose.xlu0.b32.start.end [1/1] (short) (narrow) %v792_v38, 8  ;;  %v828_v48 = vpack.c.bf16 %v759_v45, %v759_v45 }
 0x1cd   : > { %v824_v51 = vpop.f32.mrf.mxu2 }
 0x1ce   : > { %v793_v39 = vpop.f32.mrf.mxu1  ;;  %v760_v41 = vpop.f32.mrf.mxu0  ;;  %v825_v52 = vadd.f32 %v1487_v50, %v824_v51 }
 0x1d0   : > { %v893_v53 = vpack.c.bf16 %v825_v52, %v825_v52 }
 0x1d2   : > { %v898_v54 = vsel %vm866_vm6, %v893_v53, 0 }
 0x1d5   : > { %v826_v55 = vpop.f32.mrf.mxu2 }
 0x26d   : > { %v845_v46 = vpop.trf.xlu0 }
 0x26e   : > { %v861_v47 = vpack.c.bf16 %v845_v46, %v845_v46 }
 0x270   : > { %v868_v49 = vsel %vm866_vm6, %v861_v47, 0 }
 0x271   : > { %877 = vmatpush.bf16.msra.mxu3 %v868_v49 }
 0x274   : > { %1335 = vmatmul.msk.bf16.vlgmr.msra.gmra.mxu3 %vm862_vm7, %v828_v48 }
 0x275   : > { %907 = vmatpush.bf16.msrb.mxu3 %v898_v54 }
 0x2f7   : > { %v879_v56 = vpop.f32.mrf.mxu3 }
 0x2f8   : > { %v883_v57 = vsel %vm862_vm7, %v879_v56, -inf }
 0x2f9   : > { %884 = vmax.xlane.f32.xlu0 %v883_v57 }
 0x2ff   : > { %v881_v58 = vpop.f32.mrf.mxu3 }
 0x36c   : > { %v885_v59 = vpop.xlane.xlu0 %884 }
 0x36d   : > { %v886_v60 = vsub.f32 %v879_v56, %v885_v59 }
 0x36f   : > { %v887_v61 = vmul.f32 1.442695, %v886_v60 }
 0x371   : > { %1488 = vpow2.f32 %v887_v61 }
 0x377   : > { %v1489_v62 = vpop.eup %1488 }
 0x378   : > { %v889_v63 = vsel %vm862_vm7, %v1489_v62, 0.0  ;;  %v892_v0 = vpack.c.bf16 %v1489_v62, %v1489_v62 }
 0x379   : > { %890 = vadd.xlane.f32.xlu1 %v889_v63 }
 0x37a   : > { %1336 = vmatmul.msk.bf16.vlgmr.msrb.gmra.mxu3 %vm862_vm7, %v892_v0 }
 0x3ec   : > { %v891_v3 = vpop.xlane.xlu1 %890 }
 0x3ed   : > { %1490 = vrcp.f32 %v891_v3 }
 0x3f3   : > { %v1491_v4 = vpop.eup %1490 }
 0x3fd   : > { %v909_v5 = vpop.f32.mrf.mxu3 }
 0x3fe   : > { %v914_v6 = vmul.f32 %v1491_v4, %v909_v5 }
 0x400   : > { %v916_v7 = vpack.c.bf16 %v914_v6, %v914_v6 }
 0x402   : > { %1337 = vmatmul.msk.bf16.vlgmr.msrb.gmra.mxu0 %vm862_vm7, %v916_v7 }
 0x405   : > { %v911_v8 = vpop.f32.mrf.mxu3 }
 0x47f   : > { %v933_v10 = vpop.f32.mrf.mxu0 }
 0x480   : > { %v937_v11 = vadd.f32 %v933_v10, %v915_v9 }
 0x482   : > { %938 = vst.msk [vmem:[#allocation3] sm:$0xff] %vm745_vm5, %v937_v11 }
 0x483   : > { %942 = sbr.rel (%p1338_p1) target bundleno = 1732 (0x6c4), region = 96 }
 0x487   : > { %v935_v12 = vpop.f32.mrf.mxu0 }
 0x488   : > { %v943_v13 = vld [vmem:[%s1777_s26] sm:$0xff]  ;;  %v1603_v19 = vmov 32.0   ;;  %v1395_v31 = vld [vmem:[%s1977_s13 + $0x8] sm:$0xff]  ;;  %v1403_v49 = vld [vmem:[%s2024_s12 + $0x38] sm:$0xff] }
 0x489   : > { %v944_v14 = vld [vmem:[#allocation3] sm:$0xff]  ;;  %v1492_v16 = vld [vmem:[%s1972_s8] ss:$0 sm:$0xff]  ;;  %1497 = vrcp.f32 %v1603_v19  ;;  %1020 = vmatpush.bf16.msra.mxu0 %v1395_v31  ;;  %1117 = vmatpush.bf16.msra.mxu1 %v1403_v49  ;;  %v1402_v50 = vld [vmem:[%s2024_s12 + $0x30] sm:$0xff] }
 0x48a   : > { %v945_v15 = vadd.f32 %v944_v14, %v943_v13  ;;  %v1394_v32 = vld [vmem:[%s1977_s13] sm:$0xff]  ;;  %v1401_v51 = vld [vmem:[%s2024_s12 + $0x28] sm:$0xff]  ;;  %v1399_v53 = vld [vmem:[%s2024_s12 + $0x18] sm:$0xff] }
 0x48b   : > { %v1493_v42 = vld [vmem:[%s2022_s11] ss:$0 sm:$0xff]  ;;  %v1398_v54 = vld [vmem:[%s2024_s12 + $0x10] sm:$0xff]  ;;  %v1397_v55 = vld [vmem:[%s2024_s12 + $0x8] sm:$0xff] }
 0x48c   : > { %v1865_v17 = vadd.f32 %v1492_v16, %v945_v15  ;;  %v1494_v45 = vld [vmem:[%s2023_s22] ss:$0 sm:$0xff] }
 0x48d   : > { %1021 = vmatpush.bf16.msra.mxu0 %v1394_v32  ;;  %1118 = vmatpush.bf16.msra.mxu1 %v1402_v50  ;;  %v1400_v52 = vld [vmem:[%s2024_s12 + $0x20] sm:$0xff] }
 0x48e   : > { %v953_v18 = vsel %vm745_vm5, %v1865_v17, 0.0  ;;  %v1495_v56 = vld [vmem:[%s2025_s24] ss:$0 sm:$0xff] }
 0x48f   : > { %954 = vadd.xlane.f32.xlu0 %v953_v18  ;;  %v1498_v20 = vpop.eup %1497  ;;  %v1396_v57 = vld [vmem:[%s2024_s12] sm:$0xff] }
 0x490   : > { %v957_v21 = vmul.f32 32.0, %v1498_v20  ;;  %vm961_vm8 = vweird.f32 %v1498_v20  ;;  %v1496_v13 = vld [vmem:[%s2026_s17] ss:$0 sm:$0xff] }
 0x491   : > { %1119 = vmatpush.bf16.msra.mxu1 %v1401_v51 }
 0x492   : > { %v958_v22 = vsub.f32 1.0, %v957_v21 }
 0x494   : > { %v959_v23 = vmul.f32 %v1498_v20, %v958_v22 }
 0x495   : > { %1120 = vmatpush.bf16.msra.mxu1 %v1400_v52 }
 0x496   : > { %v960_v24 = vadd.f32 %v1498_v20, %v959_v23 }
 0x498   : > { %v962_v25 = vsel %vm961_vm8, %v1498_v20, %v960_v24 }
 0x499   : > { %1121 = vmatpush.bf16.msra.mxu1 %v1399_v53 }
 0x49d   : > { %1122 = vmatpush.bf16.msra.mxu1 %v1398_v54 }
 0x4a1   : > { %1123 = vmatpush.bf16.msra.mxu1 %v1397_v55 }
 0x4a5   : > { %1124 = vmatpush.bf16.msra.mxu1 %v1396_v57 }
 0x502   : > { %v955_v26 = vpop.xlane.xlu0 %954 }
 0x503   : > { %v963_v27 = vmul.f32 %v962_v25, %v955_v26 }
 0x505   : > { %v964_v28 = vsub.f32 %v1865_v17, %v963_v27 }
 0x507   : > { %v965_v29 = vmul.f32 %v964_v28, %v964_v28 }
 0x509   : > { %v966_v30 = vsel %vm745_vm5, %v965_v29, 0.0 }
 0x50a   : > { %967 = vadd.xlane.f32.xlu0 %v966_v30 }
 0x57d   : > { %v968_v33 = vpop.xlane.xlu0 %967 }
 0x57e   : > { %v969_v34 = vmul.f32 %v968_v33, %v962_v25 }
 0x580   : > { %v970_v35 = vadd.f32 1e-05, %v969_v34 }
 0x582   : > { %1499 = vrsqrt.f32 %v970_v35  ;;  %vm977_vm10 = vweird.f32 %v970_v35 }
 0x588   : > { %v1500_v36 = vpop.eup %1499 }
 0x589   : > { %v972_v37 = vmul.f32 %v1500_v36, %v970_v35  ;;  %vm978_vm9 = vweird.f32 %v1500_v36 }
 0x58a   : > { %vm979_vm11 = vmor %vm977_vm10, %vm978_vm9 }
 0x58b   : > { %v973_v38 = vmul.f32 %v1500_v36, %v972_v37 }
 0x58d   : > { %v974_v39 = vmul.f32 0.5, %v973_v38 }
 0x58f   : > { %v975_v40 = vsub.f32 1.5, %v974_v39 }
 0x591   : > { %v976_v41 = vmul.f32 %v1500_v36, %v975_v40 }
 0x593   : > { %v980_v43 = vsel %vm979_vm11, %v1500_v36, %v976_v41 }
 0x594   : > { %v981_v44 = vmul.f32 %v980_v43, %v964_v28 }
 0x596   : > { %v985_v46 = vmul.f32 %v1493_v42, %v981_v44 }
 0x598   : > { %v989_v47 = vadd.f32 %v1494_v45, %v985_v46 }
 0x59a   : > { %v990_v48 = vpack.c.bf16 %v989_v47, %v989_v47 }
 0x59c   : > { %1347 = vmatmul.msk.bf16.vlgmr.msra.gmra.mxu0 %vm745_vm5, %v990_v48 }
 0x619   : > { %v1023_v58 = vpop.f32.mrf.mxu0 }
 0x61a   : > { %v1024_v59 = vadd.f32 %v1495_v56, %v1023_v58 }
 0x61c   : > { %v1348_v60 = vmul.f32 -1.702, %v1024_v59 }
 0x61e   : > { %v1029_v61 = vmul.f32 1.442695, %v1348_v60 }
 0x620   : > { %1501 = vpow2.f32 %v1029_v61 }
 0x621   : > { %v1025_v62 = vpop.f32.mrf.mxu0 }
 0x626   : > { %v1502_v63 = vpop.eup %1501 }
 0x627   : > { %v1031_v0 = vadd.f32 1.0, %v1502_v63 }
 0x629   : > { %1503 = vrcp.f32 %v1031_v0  ;;  %v1043_v4 = vand.u32 2147483648, %v1031_v0  ;;  %v1041_v6 = vand.u32 2147483647, %v1031_v0  ;;  %vm1037_vm13 = vweird.f32 %v1031_v0 }
 0x62b   : > { %v1044_v8 = vor.u32 1.1754944e-38, %v1043_v4  ;;  %vm1042_vm15 = vcmp.eq.f32.partialorder %v1041_v6, 8.507059e+37 }
 0x62f   : > { %v1504_v1 = vpop.eup %1503 }
 0x630   : > { %v1033_v2 = vmul.f32 %v1504_v1, %v1031_v0  ;;  %vm1038_vm12 = vweird.f32 %v1504_v1 }
 0x631   : > { %vm1039_vm14 = vmor %vm1037_vm13, %vm1038_vm12 }
 0x632   : > { %v1034_v3 = vsub.f32 1.0, %v1033_v2 }
 0x634   : > { %v1035_v5 = vmul.f32 %v1504_v1, %v1034_v3 }
 0x636   : > { %v1036_v7 = vadd.f32 %v1504_v1, %v1035_v5 }
 0x638   : > { %v1040_v9 = vsel %vm1039_vm14, %v1504_v1, %v1036_v7 }
 0x639   : > { %v1045_v10 = vsel %vm1042_vm15, %v1044_v8, %v1040_v9 }
 0x63a   : > { %v1047_v11 = vmul.f32 %v1045_v10, %v1024_v59 }
 0x63c   : > { %v1048_v12 = vpack.c.bf16 %v1047_v11, %v1047_v11 }
 0x63e   : > { %1125 = vmatmul.bf16.vlgmr.msra.gmra.mxu1 %v1048_v12 }
 0x6bb   : > { %v1126_v14 = vpop.f32.mrf.mxu1 }
 0x6bc   : > { %v1127_v15 = vadd.f32 %v1496_v13, %v1126_v14 }
 0x6be   : > { %v1130_v16 = vadd.f32 %v1127_v15, %v1865_v17 }
 0x6c0   : > { %1131 = vst.msk [vmem:[%s642_s15] sm:$0xff] %vm745_vm5, %v1130_v16 }
 0x6c3   : > { %v1128_v18 = vpop.f32.mrf.mxu1 }
 0x6c4 PF: > { %s2027_s0 = sld [smem:[#allocation10_spill]]  ;;  %s1145_s28 = sshll.u32 %s642_s15, 4  ;;  %s1146_s28 = int_to_ptr.vmem [resolvable:$true] %s1145_s28 }
 0x6c5   : > { %s2028_s18 = sld [smem:[#allocation8_spill]] }
 0x6c6   : > { %s2030_s19 = sld [smem:[#allocation26_spill]] }
 0x6ca   : > { %s1382_s30 = sshll.u32 %s2027_s0, 3 }
 0x6cb   : > { %s2031_s11 = sand.u32 1, %s2028_s18  }
 0x6cc   : > { %s1143_s25 = scalar_lea.hbm %s2030_s19, %s1382_s30  ;;  %s1133_s16 = scalar_lea.sflag [#allocation5], %s2031_s11 }
 0x6cd   : > { %s1147_s14 = sshll.u32 %s1143_s25, 4  ;;  %s1525_s21 = scalar_lea.hbm %s2030_s19, 16  ;;  %s1148_s14 = int_to_ptr.hbm [resolvable:$true] %s1147_s14 }
 0x6ce   : > { %s1519_s24 = sshra.s32 %s1148_s14, 4  ;;  %s1520_s24 = int_to_ptr.hbm [resolvable:$true] %s1519_s24 }
 0x6cf   : > { %s1521_s22 = scalar_lea.hbm %s1520_s24, 8  ;;  %p1526_p6 = scmp.lt.s32.totalorder %s1520_s24, %s2030_s19 }
 0x6d0   : > { %p1522_p2 = scmp.ne.s32.totalorder %s1520_s24, %s1521_s22  ;;  %p1527_p7 = scmp.lt.s32.totalorder %s1525_s21, %s1521_s22 }
 0x6d2   : > { %p1523_p4 = pnand %p1522_p2, %p1743_p3  ;;  %p1528_p8 = por %p1527_p7, %p1526_p6 }
 0x6d4   : > { %p1524_p5 = pneg %p1523_p4 }
 0x6d6   : > { %p1529_p10 = pnand %p1528_p8, %p1524_p5 }
 0x6d8   : > { %1532 = shalt.err (!%p1529_p10)
}
 0x6d9   : > { %1404 = dma.vmem_to_hbm [thread:$0]  (%p1743_p3), %s1146_s28, 128, %s1148_s14, %s1133_s16  }
 0x6da PF: > { %s2032_s29 = sld [smem:[#allocation13_spill]] }
 0x6db   : > { %s2033_s15 = sld [smem:[#allocation7_spill]] }
 0x6e0   : > { %p1410_p11 = scmp.ge.s32.totalorder %s2032_s29, 2 }
 0x6e1   : > { %s1159_s30 = sand.u32 1, %s2033_s15  }
 0x6e2   : > { %p1407_p12 = pnand %p1410_p11, %p1753_p9  ;;  %s1160_s26 = scalar_lea.sflag [#allocation5], %s1159_s30 }
 0x6e4   : > { %p1408_p13 = pneg %p1407_p12 }
 0x6e6   : > { %1566 = dma.done.wait (%p1408_p13), %s1160_s26, 128  }
 0x6e7   : > { %1568 = vsyncadd (%p1408_p13), %s1160_s26, 4294967168  ;;  %s30_s30 = sadd.s32 1, %s2032_s29   ;;  %s2035_s24 = sld [smem:[#allocation8_spill]] }
 0x6e8   : > { %p27_p0 = scmp.ge.s32.totalorder %s30_s30, 10   ;;  %s2036_s25 = sld [smem:[#allocation9_spill]] }
 0x6e9   : > { %s2037_s26 = sld [smem:[#allocation18_spill]] }
 0x6ea   : > { %s2038_s27 = sld [smem:[#allocation11_spill]]  ;;  %29 = sbr.rel (!%p27_p0) target bundleno = 14 (0xe), region = 152 }
 0x6eb   : > { %s2039_s28 = sld [smem:[#allocation12_spill]] }
 0x6ec   : > { %s2040_s29 = sld [smem:[#allocation14_spill]] }
 0x6ed   : > { %s2041_s0 = sld [smem:[#allocation16_spill]] }
 0x6ef   :  { %1166 = vsyncpa [#allocation5], 1 }
 0x6f0   :  { %1168 = vsyncpa [#allocation5 + $0x1], 1 }

</bundles_post_ra>
